<compile_context>
chip_gen: v6e
topology: v6e:2x2x1
jax: 0.10.0
libtpu: 0.0.40
codegen_flags: <defaults>
</compile_context>

<pallas_src>
from functools import partial

import jax
import jax.numpy as jnp
from jax.experimental import pallas as pl
from jax.experimental.pallas import tpu as pltpu


def _layernorm(v, g, b, eps=1e-5):
    mu = jnp.mean(v, axis=-1, keepdims=True)
    var = jnp.mean((v - mu) ** 2, axis=-1, keepdims=True)
    return (v - mu) * jax.lax.rsqrt(var + eps) * g + b


def encoder_stack_kernel(x_ref, bias_ref,
                         wqkv_ref, wo_ref, bo_ref, g1_ref, b1_ref,
                         wf1_ref, bf1_ref, wf2_ref, bf2_ref, g2_ref, b2_ref,
                         out_ref, attn_ref,
                         *, heads, head_dim, nb, seq):
    H, D = heads, head_dim
    E = H * D
    M = nb * seq                      # matmul M-dim: Nb batch elements * seq

    layer = pl.program_id(1)
    n_layers = pl.num_programs(1)

    # Layer 0: seed the resident activation buffer with the embeddings.
    # (out_ref's block index does not depend on the layer axis, so the same
    #  VMEM buffer carries the activations across all layers.)
    @pl.when(layer == 0)
    def _():
        out_ref[...] = x_ref[...]

    x = out_ref[...]                  # (Nb, S, E)  f32 — current activations
    x2 = x.reshape(M, E)

    # ---- fused Q/K/V projection: one (M,E)x(E,3E) bf16 MXU pass -------------
    # wqkv already contains block-diag(Wq^T)*1/sqrt(E), block-diag(Wk^T),
    # block-diag(Wv^T) concatenated along the output dim.
    qkv = jnp.dot(x2.astype(jnp.bfloat16), wqkv_ref[0],
                  preferred_element_type=jnp.float32)           # (M, 3E) f32
    qkv3 = qkv.reshape(nb, seq, 3 * E)

    bias = bias_ref[...]              # (Nb, 1, S) additive key-pad bias (0 / -1e20)

    head_ctx = []
    head_attn = []
    for h in range(H):                # static, small head count
        q_h = qkv3[:, :, h * D:(h + 1) * D].astype(jnp.bfloat16)          # (Nb,S,D)
        k_h = qkv3[:, :, E + h * D:E + (h + 1) * D].astype(jnp.bfloat16)  # (Nb,S,D)
        v_h = qkv3[:, :, 2 * E + h * D:2 * E + (h + 1) * D].astype(jnp.bfloat16)

        energy = jnp.einsum('bqd,bkd->bqk', q_h, k_h,
                            preferred_element_type=jnp.float32)  # (Nb,S,S), pre-scaled
        energy = energy + bias                                   # mask as additive bias

        m = jnp.max(energy, axis=-1, keepdims=True)
        p = jnp.exp(energy - m)
        denom = jnp.sum(p, axis=-1, keepdims=True)
        attn = p * pl.reciprocal(denom, approx=True)             # softmax, dim = key
        head_attn.append(attn)

        head_ctx.append(jnp.einsum('bqk,bkd->bqd', attn.astype(jnp.bfloat16), v_h,
                                   preferred_element_type=jnp.float32))

    # Emit the attention map only for the final layer (others are discarded
    # upstream); the block is resident, so HBM writeback happens exactly once.
    @pl.when(layer == n_layers - 1)
    def _():
        for h in range(H):
            a = head_attn[h]
            for b in range(nb):
                attn_ref[b, h] = a[b]

    ctx = jnp.concatenate(head_ctx, axis=-1).reshape(M, E)        # (M, E) f32

    # ---- output projection + residual + LayerNorm ---------------------------
    attn_proj = jnp.dot(ctx.astype(jnp.bfloat16), wo_ref[0],
                        preferred_element_type=jnp.float32) + bo_ref[0]
    # dropout(...) is identity in eval mode
    x1 = _layernorm(attn_proj + x2, g1_ref[0], b1_ref[0])         # norm1

    # ---- feed-forward + residual + LayerNorm --------------------------------
    hid = jnp.maximum(
        jnp.dot(x1.astype(jnp.bfloat16), wf1_ref[0],
                preferred_element_type=jnp.float32) + bf1_ref[0], 0.0)    # ReLU
    ff = jnp.dot(hid.astype(jnp.bfloat16), wf2_ref[0],
                 preferred_element_type=jnp.float32) + bf2_ref[0]
    y = _layernorm(ff + x1, g2_ref[0], b2_ref[0])                 # norm2

    out_ref[...] = y.reshape(nb, seq, E)


def _pick_batch_block(n):
    for nb in (8, 4, 2, 1):
        if n % nb == 0:
            return nb
    return 1


def encoder_pallas(x, mask_bias, packed, heads):
    N, S, E = x.shape
    H = heads
    L = packed["wqkv"].shape[0]
    Nb = _pick_batch_block(N)
    grid = (N // Nb, L)

    def batch_map3(b, l):
        return (b, 0, 0)

    def batch_map4(b, l):
        return (b, 0, 0, 0)

    def layer_map(b, l):
        return (l, 0, 0)

    weight_order = ["wqkv", "wo", "bo", "g1", "b1",
                    "wf1", "bf1", "wf2", "bf2", "g2", "b2"]
    weights = [packed[k] for k in weight_order]

    in_specs = ([pl.BlockSpec((Nb, S, E), batch_map3),
                 pl.BlockSpec((Nb, 1, S), batch_map3)]
                + [pl.BlockSpec((1,) + w.shape[1:], layer_map) for w in weights])

    out_specs = [pl.BlockSpec((Nb, S, E), batch_map3),
                 pl.BlockSpec((Nb, H, S, S), batch_map4)]

    out_shape = (jax.ShapeDtypeStruct((N, S, E), jnp.float32),
                 jax.ShapeDtypeStruct((N, H, S, S), jnp.float32))

    kernel = partial(encoder_stack_kernel, heads=H, head_dim=E // H,
                     nb=Nb, seq=S)

    out, attn = pl.pallas_call(
        kernel,
        out_shape=out_shape,
        grid_spec=pltpu.PrefetchScalarGridSpec(
            num_scalar_prefetch=0,
            grid=grid,
            in_specs=in_specs,
            out_specs=out_specs,
        ),
        compiler_params=pltpu.CompilerParams(
            dimension_semantics=("parallel", "arbitrary"),
            vmem_limit_bytes=48 * 1024 * 1024),
    )(x, mask_bias, *weights)
    return out, attn


def pack_layer_params(layers, heads, embed_size):
    """Pre-transpose / pre-pack per-layer weights into stacked arrays."""
    E = embed_size
    scale = 1.0 / jnp.sqrt(jnp.float32(E))
    eye_h = jnp.eye(heads, dtype=jnp.float32)

    acc = {k: [] for k in ["wqkv", "wo", "bo", "g1", "b1",
                           "wf1", "bf1", "wf2", "bf2", "g2", "b2"]}
    for p in layers:
        # block-diag(W^T): full-width (E,E) matrices so Q/K/V are one matmul.
        wq_bd = jnp.kron(eye_h, p["wq"].T) * scale     # fold 1/sqrt(E) into Q
        wk_bd = jnp.kron(eye_h, p["wk"].T)
        wv_bd = jnp.kron(eye_h, p["wv"].T)
        acc["wqkv"].append(jnp.concatenate([wq_bd, wk_bd, wv_bd],
                                           axis=1).astype(jnp.bfloat16))
        acc["wo"].append(p["wo"].T.astype(jnp.bfloat16))     # (E, E)
        acc["bo"].append(p["bo"].astype(jnp.float32))        # (1, E)
        acc["g1"].append(p["g1"].astype(jnp.float32))
        acc["b1"].append(p["b1"].astype(jnp.float32))
        acc["wf1"].append(p["wf1"].T.astype(jnp.bfloat16))   # (E, F)
        acc["bf1"].append(p["bf1"].astype(jnp.float32))      # (1, F)
        acc["wf2"].append(p["wf2"].T.astype(jnp.bfloat16))   # (F, E)
        acc["bf2"].append(p["bf2"].astype(jnp.float32))
        acc["g2"].append(p["g2"].astype(jnp.float32))
        acc["b2"].append(p["b2"].astype(jnp.float32))
    return {k: jnp.stack(v, axis=0) for k, v in acc.items()}


def init_params(key, *, src_vocab_size, embed_size, num_layers, heads,
                forward_expansion):
    D = embed_size // heads
    F = forward_expansion * embed_size
    keys = jax.random.split(key, 1 + num_layers)
    emb = 0.02 * jax.random.normal(keys[0], (src_vocab_size, embed_size),
                                   jnp.float32)
    layers = []
    for i in range(num_layers):
        ks = jax.random.split(keys[1 + i], 6)
        layers.append(dict(
            wv=jax.random.normal(ks[0], (D, D), jnp.float32) / jnp.sqrt(D),
            wk=jax.random.normal(ks[1], (D, D), jnp.float32) / jnp.sqrt(D),
            wq=jax.random.normal(ks[2], (D, D), jnp.float32) / jnp.sqrt(D),
            wo=jax.random.normal(ks[3], (embed_size, embed_size),
                                 jnp.float32) / jnp.sqrt(embed_size),
            bo=jnp.zeros((1, embed_size), jnp.float32),
            g1=jnp.ones((1, embed_size), jnp.float32),
            b1=jnp.zeros((1, embed_size), jnp.float32),
            wf1=jax.random.normal(ks[4], (F, embed_size),
                                  jnp.float32) / jnp.sqrt(embed_size),
            bf1=jnp.zeros((1, F), jnp.float32),
            wf2=jax.random.normal(ks[5], (embed_size, F),
                                  jnp.float32) / jnp.sqrt(F),
            bf2=jnp.zeros((1, embed_size), jnp.float32),
            g2=jnp.ones((1, embed_size), jnp.float32),
            b2=jnp.zeros((1, embed_size), jnp.float32),
        ))
    return emb, layers


def encoder_forward(tokens, mask, emb, layers, heads):
    N, S = tokens.shape
    # word embedding lookup (plain-JAX gather); dropout == identity (eval mode)
    out = jnp.take(emb, tokens, axis=0)                         # (N, S, E) f32
    # key-padding mask as an additive bias (0 keep / -1e20 mask), broadcast
    # over heads and query positions inside the kernel.
    mask_bias = jnp.where(mask == 0, jnp.float32(-1e20),
                          jnp.float32(0.0)).reshape(N, 1, S)
    packed = pack_layer_params(layers, heads, out.shape[-1])
    return encoder_pallas(out, mask_bias, packed, heads)


if __name__ == "__main__":
    # small config consistent with the module's forward
    N, S = 2, 8
    embed_size, heads = 32, 4
    num_layers, forward_expansion = 2, 4
    src_vocab_size = 50

    key = jax.random.PRNGKey(0)
    k_tok, k_par = jax.random.split(key)

    tokens = jax.random.randint(k_tok, (N, S), 0, src_vocab_size, jnp.int32)
    mask = jnp.ones((N, S), jnp.float32)          # key-padding mask, all keep

    emb, layers = init_params(
        k_par, src_vocab_size=src_vocab_size, embed_size=embed_size,
        num_layers=num_layers, heads=heads, forward_expansion=forward_expansion)

    out, attn = encoder_forward(tokens, mask, emb, layers, heads)
    jax.block_until_ready((out, attn))

    assert out.shape == (N, S, embed_size)
    assert attn.shape == (N, heads, S, S)
    assert bool(jnp.all(jnp.isfinite(out)))
    print("KERNEL_OK")
</pallas_src>

<mosaic_0001>
module attributes {stable_mosaic.version = 11 : i64} {
  func.func @encoder_stack_kernel(%arg0: i32, %arg1: i32, %arg2: memref<2x8x32xf32, #tpu.memory_space<vmem>>, %arg3: memref<2x1x8xf32, #tpu.memory_space<vmem>>, %arg4: memref<1x32x96xbf16, #tpu.memory_space<vmem>>, %arg5: memref<1x32x32xbf16, #tpu.memory_space<vmem>>, %arg6: memref<1x1x32xf32, #tpu.memory_space<vmem>>, %arg7: memref<1x1x32xf32, #tpu.memory_space<vmem>>, %arg8: memref<1x1x32xf32, #tpu.memory_space<vmem>>, %arg9: memref<1x32x128xbf16, #tpu.memory_space<vmem>>, %arg10: memref<1x1x128xf32, #tpu.memory_space<vmem>>, %arg11: memref<1x128x32xbf16, #tpu.memory_space<vmem>>, %arg12: memref<1x1x32xf32, #tpu.memory_space<vmem>>, %arg13: memref<1x1x32xf32, #tpu.memory_space<vmem>>, %arg14: memref<1x1x32xf32, #tpu.memory_space<vmem>>, %arg15: memref<2x8x32xf32, #tpu.memory_space<vmem>>, %arg16: memref<2x4x8x8xf32, #tpu.memory_space<vmem>>) attributes {dimension_semantics = [#tpu.dimension_semantics<parallel>, #tpu.dimension_semantics<arbitrary>], iteration_bounds = array<i64: 1, 2>, scalar_prefetch = 0 : i64, scratch_operands = 0 : i64, tpu.core_type = #tpu.core_type<tc>, window_params = [{transform_indices = @transform_0, window_bounds = array<i64: 2, 8, 32>}, {transform_indices = @transform_1, window_bounds = array<i64: 2, 1, 8>}, {transform_indices = @transform_2, window_bounds = array<i64: 1, 32, 96>}, {transform_indices = @transform_3, window_bounds = array<i64: 1, 32, 32>}, {transform_indices = @transform_4, window_bounds = array<i64: 1, 1, 32>}, {transform_indices = @transform_5, window_bounds = array<i64: 1, 1, 32>}, {transform_indices = @transform_6, window_bounds = array<i64: 1, 1, 32>}, {transform_indices = @transform_7, window_bounds = array<i64: 1, 32, 128>}, {transform_indices = @transform_8, window_bounds = array<i64: 1, 1, 128>}, {transform_indices = @transform_9, window_bounds = array<i64: 1, 128, 32>}, {transform_indices = @transform_10, window_bounds = array<i64: 1, 1, 32>}, {transform_indices = @transform_11, window_bounds = array<i64: 1, 1, 32>}, {transform_indices = @transform_12, window_bounds = array<i64: 1, 1, 32>}, {transform_indices = @transform_13, window_bounds = array<i64: 2, 8, 32>}, {transform_indices = @transform_14, window_bounds = array<i64: 2, 4, 8, 8>}]} {
    %c0_i32 = arith.constant 0 : i32
    %0 = arith.cmpi eq, %arg1, %c0_i32 : i32
    %1 = arith.extui %0 : i1 to i32
    %c0_i32_0 = arith.constant 0 : i32
    %2 = arith.cmpi ne, %1, %c0_i32_0 : i32
    scf.if %2 {
      %c0_73 = arith.constant 0 : index
      %c0_74 = arith.constant 0 : index
      %c0_75 = arith.constant 0 : index
      %182 = vector.load %arg2[%c0_73, %c0_74, %c0_75] : memref<2x8x32xf32, #tpu.memory_space<vmem>>, vector<2x8x32xf32>
      %c0_76 = arith.constant 0 : index
      %c0_77 = arith.constant 0 : index
      %c0_78 = arith.constant 0 : index
      %183 = vector.load %arg15[%c0_76, %c0_77, %c0_78] : memref<2x8x32xf32, #tpu.memory_space<vmem>>, vector<2x8x32xf32>
      tpu.vector_store %arg15[%c0_76, %c0_77, %c0_78], %182 {strides = array<i32>} : memref<2x8x32xf32, #tpu.memory_space<vmem>>, vector<2x8x32xf32>,
    } else {
    }
    %c0 = arith.constant 0 : index
    %c0_1 = arith.constant 0 : index
    %c0_2 = arith.constant 0 : index
    %3 = vector.load %arg15[%c0, %c0_1, %c0_2] : memref<2x8x32xf32, #tpu.memory_space<vmem>>, vector<2x8x32xf32>
    %4 = vector.shape_cast %3 : vector<2x8x32xf32> to vector<16x32xf32>
    %5 = arith.truncf %4 : vector<16x32xf32> to vector<16x32xbf16>
    %c0_3 = arith.constant 0 : index
    %c0_4 = arith.constant 0 : index
    %c0_5 = arith.constant 0 : index
    %6 = vector.load %arg4[%c0_3, %c0_4, %c0_5] : memref<1x32x96xbf16, #tpu.memory_space<vmem>>, vector<1x32x96xbf16>
    %7 = vector.shape_cast %6 : vector<1x32x96xbf16> to vector<32x96xbf16>
    %cst = arith.constant dense<0.000000e+00> : vector<16x96xf32>
    %8 = tpu.matmul %5, %7, %cst {dimension_numbers = #tpu.dot_dimension_numbers<[1], [0], [0], [1], [0, 0, 1, 1], [], []>} : vector<16x32xbf16>, vector<32x96xbf16>, vector<16x96xf32> -> vector<16x96xf32>
    %9 = vector.shape_cast %8 : vector<16x96xf32> to vector<2x8x96xf32>
    %c0_6 = arith.constant 0 : index
    %c0_7 = arith.constant 0 : index
    %c0_8 = arith.constant 0 : index
    %10 = vector.load %arg3[%c0_6, %c0_7, %c0_8] : memref<2x1x8xf32, #tpu.memory_space<vmem>>, vector<2x1x8xf32>
    %11 = vector.extract_strided_slice %9 {offsets = [0, 0, 0], sizes = [2, 8, 8], strides = [1, 1, 1]} : vector<2x8x96xf32> to vector<2x8x8xf32>
    %12 = arith.truncf %11 : vector<2x8x8xf32> to vector<2x8x8xbf16>
    %13 = vector.extract_strided_slice %9 {offsets = [0, 0, 32], sizes = [2, 8, 8], strides = [1, 1, 1]} : vector<2x8x96xf32> to vector<2x8x8xf32>
    %14 = arith.truncf %13 : vector<2x8x8xf32> to vector<2x8x8xbf16>
    %15 = vector.extract_strided_slice %9 {offsets = [0, 0, 64], sizes = [2, 8, 8], strides = [1, 1, 1]} : vector<2x8x96xf32> to vector<2x8x8xf32>
    %16 = arith.truncf %15 : vector<2x8x8xf32> to vector<2x8x8xbf16>
    "tpu.trace_start"() <{level = 10 : i32, message = "bqd,bkd->bqk"}> : () -> ()
    %cst_9 = arith.constant dense<0.000000e+00> : vector<2x8x8xf32>
    %17 = tpu.matmul %12, %14, %cst_9 {dimension_numbers = #tpu.dot_dimension_numbers<[2], [2], [1], [1], [0, 0, 0, 1, 1, 1], [0], [0]>} : vector<2x8x8xbf16>, vector<2x8x8xbf16>, vector<2x8x8xf32> -> vector<2x8x8xf32>
    "tpu.trace_stop"() : () -> ()
    %18 = vector.broadcast %10 : vector<2x1x8xf32> to vector<2x8x8xf32>
    %19 = arith.addf %17, %18 : vector<2x8x8xf32>
    %cst_10 = arith.constant dense<0xFF800000> : vector<2x8xf32>
    %20 = vector.multi_reduction <maximumf>, %19, %cst_10 [2] : vector<2x8x8xf32> to vector<2x8xf32>
    %21 = vector.shape_cast %20 : vector<2x8xf32> to vector<2x8x1xf32>
    %22 = vector.broadcast %21 : vector<2x8x1xf32> to vector<2x8x8xf32>
    %23 = arith.subf %19, %22 : vector<2x8x8xf32>
    %24 = math.exp %23 : vector<2x8x8xf32>
    %cst_11 = arith.constant dense<0.000000e+00> : vector<2x8xf32>
    %25 = vector.multi_reduction <add>, %24, %cst_11 [2] : vector<2x8x8xf32> to vector<2x8xf32>
    %26 = vector.shape_cast %25 : vector<2x8xf32> to vector<2x8x1xf32>
    %27 = tpu.reciprocal %26 {approx = true} : vector<2x8x1xf32> -> vector<2x8x1xf32>
    %28 = vector.broadcast %27 : vector<2x8x1xf32> to vector<2x8x8xf32>
    %29 = arith.mulf %24, %28 : vector<2x8x8xf32>
    %30 = arith.truncf %29 : vector<2x8x8xf32> to vector<2x8x8xbf16>
    "tpu.trace_start"() <{level = 10 : i32, message = "bqk,bkd->bqd"}> : () -> ()
    %cst_12 = arith.constant dense<0.000000e+00> : vector<2x8x8xf32>
    %31 = tpu.matmul %30, %16, %cst_12 {dimension_numbers = #tpu.dot_dimension_numbers<[2], [1], [1], [2], [0, 0, 0, 1, 1, 2], [0], [0]>} : vector<2x8x8xbf16>, vector<2x8x8xbf16>, vector<2x8x8xf32> -> vector<2x8x8xf32>
    "tpu.trace_stop"() : () -> ()
    %32 = vector.extract_strided_slice %9 {offsets = [0, 0, 8], sizes = [2, 8, 8], strides = [1, 1, 1]} : vector<2x8x96xf32> to vector<2x8x8xf32>
    %33 = arith.truncf %32 : vector<2x8x8xf32> to vector<2x8x8xbf16>
    %34 = vector.extract_strided_slice %9 {offsets = [0, 0, 40], sizes = [2, 8, 8], strides = [1, 1, 1]} : vector<2x8x96xf32> to vector<2x8x8xf32>
    %35 = arith.truncf %34 : vector<2x8x8xf32> to vector<2x8x8xbf16>
    %36 = vector.extract_strided_slice %9 {offsets = [0, 0, 72], sizes = [2, 8, 8], strides = [1, 1, 1]} : vector<2x8x96xf32> to vector<2x8x8xf32>
    %37 = arith.truncf %36 : vector<2x8x8xf32> to vector<2x8x8xbf16>
    "tpu.trace_start"() <{level = 10 : i32, message = "bqd,bkd->bqk"}> : () -> ()
    %cst_13 = arith.constant dense<0.000000e+00> : vector<2x8x8xf32>
    %38 = tpu.matmul %33, %35, %cst_13 {dimension_numbers = #tpu.dot_dimension_numbers<[2], [2], [1], [1], [0, 0, 0, 1, 1, 1], [0], [0]>} : vector<2x8x8xbf16>, vector<2x8x8xbf16>, vector<2x8x8xf32> -> vector<2x8x8xf32>
    "tpu.trace_stop"() : () -> ()
    %39 = vector.broadcast %10 : vector<2x1x8xf32> to vector<2x8x8xf32>
    %40 = arith.addf %38, %39 : vector<2x8x8xf32>
    %cst_14 = arith.constant dense<0xFF800000> : vector<2x8xf32>
    %41 = vector.multi_reduction <maximumf>, %40, %cst_14 [2] : vector<2x8x8xf32> to vector<2x8xf32>
    %42 = vector.shape_cast %41 : vector<2x8xf32> to vector<2x8x1xf32>
    %43 = vector.broadcast %42 : vector<2x8x1xf32> to vector<2x8x8xf32>
    %44 = arith.subf %40, %43 : vector<2x8x8xf32>
    %45 = math.exp %44 : vector<2x8x8xf32>
    %cst_15 = arith.constant dense<0.000000e+00> : vector<2x8xf32>
    %46 = vector.multi_reduction <add>, %45, %cst_15 [2] : vector<2x8x8xf32> to vector<2x8xf32>
    %47 = vector.shape_cast %46 : vector<2x8xf32> to vector<2x8x1xf32>
    %48 = tpu.reciprocal %47 {approx = true} : vector<2x8x1xf32> -> vector<2x8x1xf32>
    %49 = vector.broadcast %48 : vector<2x8x1xf32> to vector<2x8x8xf32>
    %50 = arith.mulf %45, %49 : vector<2x8x8xf32>
    %51 = arith.truncf %50 : vector<2x8x8xf32> to vector<2x8x8xbf16>
    "tpu.trace_start"() <{level = 10 : i32, message = "bqk,bkd->bqd"}> : () -> ()
    %cst_16 = arith.constant dense<0.000000e+00> : vector<2x8x8xf32>
    %52 = tpu.matmul %51, %37, %cst_16 {dimension_numbers = #tpu.dot_dimension_numbers<[2], [1], [1], [2], [0, 0, 0, 1, 1, 2], [0], [0]>} : vector<2x8x8xbf16>, vector<2x8x8xbf16>, vector<2x8x8xf32> -> vector<2x8x8xf32>
    "tpu.trace_stop"() : () -> ()
    %53 = vector.extract_strided_slice %9 {offsets = [0, 0, 16], sizes = [2, 8, 8], strides = [1, 1, 1]} : vector<2x8x96xf32> to vector<2x8x8xf32>
    %54 = arith.truncf %53 : vector<2x8x8xf32> to vector<2x8x8xbf16>
    %55 = vector.extract_strided_slice %9 {offsets = [0, 0, 48], sizes = [2, 8, 8], strides = [1, 1, 1]} : vector<2x8x96xf32> to vector<2x8x8xf32>
    %56 = arith.truncf %55 : vector<2x8x8xf32> to vector<2x8x8xbf16>
    %57 = vector.extract_strided_slice %9 {offsets = [0, 0, 80], sizes = [2, 8, 8], strides = [1, 1, 1]} : vector<2x8x96xf32> to vector<2x8x8xf32>
    %58 = arith.truncf %57 : vector<2x8x8xf32> to vector<2x8x8xbf16>
    "tpu.trace_start"() <{level = 10 : i32, message = "bqd,bkd->bqk"}> : () -> ()
    %cst_17 = arith.constant dense<0.000000e+00> : vector<2x8x8xf32>
    %59 = tpu.matmul %54, %56, %cst_17 {dimension_numbers = #tpu.dot_dimension_numbers<[2], [2], [1], [1], [0, 0, 0, 1, 1, 1], [0], [0]>} : vector<2x8x8xbf16>, vector<2x8x8xbf16>, vector<2x8x8xf32> -> vector<2x8x8xf32>
    "tpu.trace_stop"() : () -> ()
    %60 = vector.broadcast %10 : vector<2x1x8xf32> to vector<2x8x8xf32>
    %61 = arith.addf %59, %60 : vector<2x8x8xf32>
    %cst_18 = arith.constant dense<0xFF800000> : vector<2x8xf32>
    %62 = vector.multi_reduction <maximumf>, %61, %cst_18 [2] : vector<2x8x8xf32> to vector<2x8xf32>
    %63 = vector.shape_cast %62 : vector<2x8xf32> to vector<2x8x1xf32>
    %64 = vector.broadcast %63 : vector<2x8x1xf32> to vector<2x8x8xf32>
    %65 = arith.subf %61, %64 : vector<2x8x8xf32>
    %66 = math.exp %65 : vector<2x8x8xf32>
    %cst_19 = arith.constant dense<0.000000e+00> : vector<2x8xf32>
    %67 = vector.multi_reduction <add>, %66, %cst_19 [2] : vector<2x8x8xf32> to vector<2x8xf32>
    %68 = vector.shape_cast %67 : vector<2x8xf32> to vector<2x8x1xf32>
    %69 = tpu.reciprocal %68 {approx = true} : vector<2x8x1xf32> -> vector<2x8x1xf32>
    %70 = vector.broadcast %69 : vector<2x8x1xf32> to vector<2x8x8xf32>
    %71 = arith.mulf %66, %70 : vector<2x8x8xf32>
    %72 = arith.truncf %71 : vector<2x8x8xf32> to vector<2x8x8xbf16>
    "tpu.trace_start"() <{level = 10 : i32, message = "bqk,bkd->bqd"}> : () -> ()
    %cst_20 = arith.constant dense<0.000000e+00> : vector<2x8x8xf32>
    %73 = tpu.matmul %72, %58, %cst_20 {dimension_numbers = #tpu.dot_dimension_numbers<[2], [1], [1], [2], [0, 0, 0, 1, 1, 2], [0], [0]>} : vector<2x8x8xbf16>, vector<2x8x8xbf16>, vector<2x8x8xf32> -> vector<2x8x8xf32>
    "tpu.trace_stop"() : () -> ()
    %74 = vector.extract_strided_slice %9 {offsets = [0, 0, 24], sizes = [2, 8, 8], strides = [1, 1, 1]} : vector<2x8x96xf32> to vector<2x8x8xf32>
    %75 = arith.truncf %74 : vector<2x8x8xf32> to vector<2x8x8xbf16>
    %76 = vector.extract_strided_slice %9 {offsets = [0, 0, 56], sizes = [2, 8, 8], strides = [1, 1, 1]} : vector<2x8x96xf32> to vector<2x8x8xf32>
    %77 = arith.truncf %76 : vector<2x8x8xf32> to vector<2x8x8xbf16>
    %78 = vector.extract_strided_slice %9 {offsets = [0, 0, 88], sizes = [2, 8, 8], strides = [1, 1, 1]} : vector<2x8x96xf32> to vector<2x8x8xf32>
    %79 = arith.truncf %78 : vector<2x8x8xf32> to vector<2x8x8xbf16>
    "tpu.trace_start"() <{level = 10 : i32, message = "bqd,bkd->bqk"}> : () -> ()
    %cst_21 = arith.constant dense<0.000000e+00> : vector<2x8x8xf32>
    %80 = tpu.matmul %75, %77, %cst_21 {dimension_numbers = #tpu.dot_dimension_numbers<[2], [2], [1], [1], [0, 0, 0, 1, 1, 1], [0], [0]>} : vector<2x8x8xbf16>, vector<2x8x8xbf16>, vector<2x8x8xf32> -> vector<2x8x8xf32>
    "tpu.trace_stop"() : () -> ()
    %81 = vector.broadcast %10 : vector<2x1x8xf32> to vector<2x8x8xf32>
    %82 = arith.addf %80, %81 : vector<2x8x8xf32>
    %cst_22 = arith.constant dense<0xFF800000> : vector<2x8xf32>
    %83 = vector.multi_reduction <maximumf>, %82, %cst_22 [2] : vector<2x8x8xf32> to vector<2x8xf32>
    %84 = vector.shape_cast %83 : vector<2x8xf32> to vector<2x8x1xf32>
    %85 = vector.broadcast %84 : vector<2x8x1xf32> to vector<2x8x8xf32>
    %86 = arith.subf %82, %85 : vector<2x8x8xf32>
    %87 = math.exp %86 : vector<2x8x8xf32>
    %cst_23 = arith.constant dense<0.000000e+00> : vector<2x8xf32>
    %88 = vector.multi_reduction <add>, %87, %cst_23 [2] : vector<2x8x8xf32> to vector<2x8xf32>
    %89 = vector.shape_cast %88 : vector<2x8xf32> to vector<2x8x1xf32>
    %90 = tpu.reciprocal %89 {approx = true} : vector<2x8x1xf32> -> vector<2x8x1xf32>
    %91 = vector.broadcast %90 : vector<2x8x1xf32> to vector<2x8x8xf32>
    %92 = arith.mulf %87, %91 : vector<2x8x8xf32>
    %93 = arith.truncf %92 : vector<2x8x8xf32> to vector<2x8x8xbf16>
    "tpu.trace_start"() <{level = 10 : i32, message = "bqk,bkd->bqd"}> : () -> ()
    %cst_24 = arith.constant dense<0.000000e+00> : vector<2x8x8xf32>
    %94 = tpu.matmul %93, %79, %cst_24 {dimension_numbers = #tpu.dot_dimension_numbers<[2], [1], [1], [2], [0, 0, 0, 1, 1, 2], [0], [0]>} : vector<2x8x8xbf16>, vector<2x8x8xbf16>, vector<2x8x8xf32> -> vector<2x8x8xf32>
    %c1_i32 = arith.constant 1 : i32
    "tpu.trace_stop"() : () -> ()
    %95 = arith.cmpi eq, %arg1, %c1_i32 : i32
    %96 = arith.extui %95 : i1 to i32
    %c0_i32_25 = arith.constant 0 : i32
    %97 = arith.cmpi ne, %96, %c0_i32_25 : i32
    scf.if %97 {
      %182 = vector.extract_strided_slice %29 {offsets = [0, 0, 0], sizes = [1, 8, 8], strides = [1, 1, 1]} : vector<2x8x8xf32> to vector<1x8x8xf32>
      %183 = vector.shape_cast %182 : vector<1x8x8xf32> to vector<8x8xf32>
      %c0_73 = arith.constant 0 : index
      %c0_74 = arith.constant 0 : index
      %c0_75 = arith.constant 0 : index
      %c0_76 = arith.constant 0 : index
      %184 = vector.load %arg16[%c0_73, %c0_74, %c0_75, %c0_76] : memref<2x4x8x8xf32, #tpu.memory_space<vmem>>, vector<1x1x8x8xf32>
      %185 = vector.shape_cast %184 : vector<1x1x8x8xf32> to vector<8x8xf32>
      %186 = vector.shape_cast %183 : vector<8x8xf32> to vector<1x1x8x8xf32>
      tpu.vector_store %arg16[%c0_73, %c0_74, %c0_75, %c0_76], %186 {strides = array<i32>} : memref<2x4x8x8xf32, #tpu.memory_space<vmem>>, vector<1x1x8x8xf32>,
      %187 = vector.extract_strided_slice %29 {offsets = [1, 0, 0], sizes = [1, 8, 8], strides = [1, 1, 1]} : vector<2x8x8xf32> to vector<1x8x8xf32>
      %188 = vector.shape_cast %187 : vector<1x8x8xf32> to vector<8x8xf32>
      %c1 = arith.constant 1 : index
      %c0_77 = arith.constant 0 : index
      %c0_78 = arith.constant 0 : index
      %c0_79 = arith.constant 0 : index
      %189 = vector.load %arg16[%c1, %c0_77, %c0_78, %c0_79] : memref<2x4x8x8xf32, #tpu.memory_space<vmem>>, vector<1x1x8x8xf32>
      %190 = vector.shape_cast %189 : vector<1x1x8x8xf32> to vector<8x8xf32>
      %191 = vector.shape_cast %188 : vector<8x8xf32> to vector<1x1x8x8xf32>
      tpu.vector_store %arg16[%c1, %c0_77, %c0_78, %c0_79], %191 {strides = array<i32>} : memref<2x4x8x8xf32, #tpu.memory_space<vmem>>, vector<1x1x8x8xf32>,
      %192 = vector.extract_strided_slice %50 {offsets = [0, 0, 0], sizes = [1, 8, 8], strides = [1, 1, 1]} : vector<2x8x8xf32> to vector<1x8x8xf32>
      %193 = vector.shape_cast %192 : vector<1x8x8xf32> to vector<8x8xf32>
      %c0_80 = arith.constant 0 : index
      %c1_81 = arith.constant 1 : index
      %c0_82 = arith.constant 0 : index
      %c0_83 = arith.constant 0 : index
      %194 = vector.load %arg16[%c0_80, %c1_81, %c0_82, %c0_83] : memref<2x4x8x8xf32, #tpu.memory_space<vmem>>, vector<1x1x8x8xf32>
      %195 = vector.shape_cast %194 : vector<1x1x8x8xf32> to vector<8x8xf32>
      %196 = vector.shape_cast %193 : vector<8x8xf32> to vector<1x1x8x8xf32>
      tpu.vector_store %arg16[%c0_80, %c1_81, %c0_82, %c0_83], %196 {strides = array<i32>} : memref<2x4x8x8xf32, #tpu.memory_space<vmem>>, vector<1x1x8x8xf32>,
      %197 = vector.extract_strided_slice %50 {offsets = [1, 0, 0], sizes = [1, 8, 8], strides = [1, 1, 1]} : vector<2x8x8xf32> to vector<1x8x8xf32>
      %198 = vector.shape_cast %197 : vector<1x8x8xf32> to vector<8x8xf32>
      %c1_84 = arith.constant 1 : index
      %c1_85 = arith.constant 1 : index
      %c0_86 = arith.constant 0 : index
      %c0_87 = arith.constant 0 : index
      %199 = vector.load %arg16[%c1_84, %c1_85, %c0_86, %c0_87] : memref<2x4x8x8xf32, #tpu.memory_space<vmem>>, vector<1x1x8x8xf32>
      %200 = vector.shape_cast %199 : vector<1x1x8x8xf32> to vector<8x8xf32>
      %201 = vector.shape_cast %198 : vector<8x8xf32> to vector<1x1x8x8xf32>
      tpu.vector_store %arg16[%c1_84, %c1_85, %c0_86, %c0_87], %201 {strides = array<i32>} : memref<2x4x8x8xf32, #tpu.memory_space<vmem>>, vector<1x1x8x8xf32>,
      %202 = vector.extract_strided_slice %71 {offsets = [0, 0, 0], sizes = [1, 8, 8], strides = [1, 1, 1]} : vector<2x8x8xf32> to vector<1x8x8xf32>
      %203 = vector.shape_cast %202 : vector<1x8x8xf32> to vector<8x8xf32>
      %c0_88 = arith.constant 0 : index
      %c2 = arith.constant 2 : index
      %c0_89 = arith.constant 0 : index
      %c0_90 = arith.constant 0 : index
      %204 = vector.load %arg16[%c0_88, %c2, %c0_89, %c0_90] : memref<2x4x8x8xf32, #tpu.memory_space<vmem>>, vector<1x1x8x8xf32>
      %205 = vector.shape_cast %204 : vector<1x1x8x8xf32> to vector<8x8xf32>
      %206 = vector.shape_cast %203 : vector<8x8xf32> to vector<1x1x8x8xf32>
      tpu.vector_store %arg16[%c0_88, %c2, %c0_89, %c0_90], %206 {strides = array<i32>} : memref<2x4x8x8xf32, #tpu.memory_space<vmem>>, vector<1x1x8x8xf32>,
      %207 = vector.extract_strided_slice %71 {offsets = [1, 0, 0], sizes = [1, 8, 8], strides = [1, 1, 1]} : vector<2x8x8xf32> to vector<1x8x8xf32>
      %208 = vector.shape_cast %207 : vector<1x8x8xf32> to vector<8x8xf32>
      %c1_91 = arith.constant 1 : index
      %c2_92 = arith.constant 2 : index
      %c0_93 = arith.constant 0 : index
      %c0_94 = arith.constant 0 : index
      %209 = vector.load %arg16[%c1_91, %c2_92, %c0_93, %c0_94] : memref<2x4x8x8xf32, #tpu.memory_space<vmem>>, vector<1x1x8x8xf32>
      %210 = vector.shape_cast %209 : vector<1x1x8x8xf32> to vector<8x8xf32>
      %211 = vector.shape_cast %208 : vector<8x8xf32> to vector<1x1x8x8xf32>
      tpu.vector_store %arg16[%c1_91, %c2_92, %c0_93, %c0_94], %211 {strides = array<i32>} : memref<2x4x8x8xf32, #tpu.memory_space<vmem>>, vector<1x1x8x8xf32>,
      %212 = vector.extract_strided_slice %92 {offsets = [0, 0, 0], sizes = [1, 8, 8], strides = [1, 1, 1]} : vector<2x8x8xf32> to vector<1x8x8xf32>
      %213 = vector.shape_cast %212 : vector<1x8x8xf32> to vector<8x8xf32>
      %c0_95 = arith.constant 0 : index
      %c3 = arith.constant 3 : index
      %c0_96 = arith.constant 0 : index
      %c0_97 = arith.constant 0 : index
      %214 = vector.load %arg16[%c0_95, %c3, %c0_96, %c0_97] : memref<2x4x8x8xf32, #tpu.memory_space<vmem>>, vector<1x1x8x8xf32>
      %215 = vector.shape_cast %214 : vector<1x1x8x8xf32> to vector<8x8xf32>
      %216 = vector.shape_cast %213 : vector<8x8xf32> to vector<1x1x8x8xf32>
      tpu.vector_store %arg16[%c0_95, %c3, %c0_96, %c0_97], %216 {strides = array<i32>} : memref<2x4x8x8xf32, #tpu.memory_space<vmem>>, vector<1x1x8x8xf32>,
      %217 = vector.extract_strided_slice %92 {offsets = [1, 0, 0], sizes = [1, 8, 8], strides = [1, 1, 1]} : vector<2x8x8xf32> to vector<1x8x8xf32>
      %218 = vector.shape_cast %217 : vector<1x8x8xf32> to vector<8x8xf32>
      %c1_98 = arith.constant 1 : index
      %c3_99 = arith.constant 3 : index
      %c0_100 = arith.constant 0 : index
      %c0_101 = arith.constant 0 : index
      %219 = vector.load %arg16[%c1_98, %c3_99, %c0_100, %c0_101] : memref<2x4x8x8xf32, #tpu.memory_space<vmem>>, vector<1x1x8x8xf32>
      %220 = vector.shape_cast %219 : vector<1x1x8x8xf32> to vector<8x8xf32>
      %221 = vector.shape_cast %218 : vector<8x8xf32> to vector<1x1x8x8xf32>
      tpu.vector_store %arg16[%c1_98, %c3_99, %c0_100, %c0_101], %221 {strides = array<i32>} : memref<2x4x8x8xf32, #tpu.memory_space<vmem>>, vector<1x1x8x8xf32>,
    } else {
    }
    %98 = tpu.concatenate %31, %52, %73, %94 in 2 : vector<2x8x8xf32>, vector<2x8x8xf32>, vector<2x8x8xf32>, vector<2x8x8xf32> -> vector<2x8x32xf32>
    %99 = vector.shape_cast %98 : vector<2x8x32xf32> to vector<16x32xf32>
    %100 = arith.truncf %99 : vector<16x32xf32> to vector<16x32xbf16>
    %c0_26 = arith.constant 0 : index
    %c0_27 = arith.constant 0 : index
    %c0_28 = arith.constant 0 : index
    %101 = vector.load %arg5[%c0_26, %c0_27, %c0_28] : memref<1x32x32xbf16, #tpu.memory_space<vmem>>, vector<1x32x32xbf16>
    %102 = vector.shape_cast %101 : vector<1x32x32xbf16> to vector<32x32xbf16>
    %cst_29 = arith.constant dense<0.000000e+00> : vector<16x32xf32>
    %103 = tpu.matmul %100, %102, %cst_29 {dimension_numbers = #tpu.dot_dimension_numbers<[1], [0], [0], [1], [0, 0, 1, 1], [], []>} : vector<16x32xbf16>, vector<32x32xbf16>, vector<16x32xf32> -> vector<16x32xf32>
    %c0_30 = arith.constant 0 : index
    %c0_31 = arith.constant 0 : index
    %c0_32 = arith.constant 0 : index
    %104 = vector.load %arg6[%c0_30, %c0_31, %c0_32] : memref<1x1x32xf32, #tpu.memory_space<vmem>>, vector<1x1x32xf32>
    %105 = vector.shape_cast %104 : vector<1x1x32xf32> to vector<1x32xf32>
    %106 = vector.broadcast %105 : vector<1x32xf32> to vector<16x32xf32>
    %107 = arith.addf %103, %106 : vector<16x32xf32>
    %108 = arith.addf %107, %4 : vector<16x32xf32>
    %c0_33 = arith.constant 0 : index
    %c0_34 = arith.constant 0 : index
    %c0_35 = arith.constant 0 : index
    %109 = vector.load %arg7[%c0_33, %c0_34, %c0_35] : memref<1x1x32xf32, #tpu.memory_space<vmem>>, vector<1x1x32xf32>
    %110 = vector.shape_cast %109 : vector<1x1x32xf32> to vector<1x32xf32>
    %c0_36 = arith.constant 0 : index
    %c0_37 = arith.constant 0 : index
    %c0_38 = arith.constant 0 : index
    %111 = vector.load %arg8[%c0_36, %c0_37, %c0_38] : memref<1x1x32xf32, #tpu.memory_space<vmem>>, vector<1x1x32xf32>
    %112 = vector.shape_cast %111 : vector<1x1x32xf32> to vector<1x32xf32>
    %cst_39 = arith.constant dense<0.000000e+00> : vector<16xf32>
    %113 = vector.multi_reduction <add>, %108, %cst_39 [1] : vector<16x32xf32> to vector<16xf32>
    %114 = vector.shape_cast %113 : vector<16xf32> to vector<16x1xf32>
    %cst_40 = arith.constant 3.200000e+01 : f32
    %115 = vector.broadcast %cst_40 : f32 to vector<16x1xf32>
    %116 = arith.divf %114, %115 : vector<16x1xf32>
    %117 = vector.broadcast %116 : vector<16x1xf32> to vector<16x32xf32>
    %118 = arith.subf %108, %117 : vector<16x32xf32>
    %119 = arith.mulf %118, %118 : vector<16x32xf32>
    %cst_41 = arith.constant dense<0.000000e+00> : vector<16xf32>
    %120 = vector.multi_reduction <add>, %119, %cst_41 [1] : vector<16x32xf32> to vector<16xf32>
    %121 = vector.shape_cast %120 : vector<16xf32> to vector<16x1xf32>
    %cst_42 = arith.constant 3.200000e+01 : f32
    %122 = vector.broadcast %cst_42 : f32 to vector<16x1xf32>
    %123 = arith.divf %121, %122 : vector<16x1xf32>
    %124 = vector.broadcast %116 : vector<16x1xf32> to vector<16x32xf32>
    %125 = arith.subf %108, %124 : vector<16x32xf32>
    %cst_43 = arith.constant 9.99999974E-6 : f32
    %126 = vector.broadcast %cst_43 : f32 to vector<16x1xf32>
    %127 = arith.addf %123, %126 : vector<16x1xf32>
    %128 = math.rsqrt %127 : vector<16x1xf32>
    %129 = vector.broadcast %128 : vector<16x1xf32> to vector<16x32xf32>
    %130 = arith.mulf %125, %129 : vector<16x32xf32>
    %131 = vector.broadcast %110 : vector<1x32xf32> to vector<16x32xf32>
    %132 = arith.mulf %130, %131 : vector<16x32xf32>
    %133 = vector.broadcast %112 : vector<1x32xf32> to vector<16x32xf32>
    %134 = arith.addf %132, %133 : vector<16x32xf32>
    %135 = arith.truncf %134 : vector<16x32xf32> to vector<16x32xbf16>
    %c0_44 = arith.constant 0 : index
    %c0_45 = arith.constant 0 : index
    %c0_46 = arith.constant 0 : index
    %136 = vector.load %arg9[%c0_44, %c0_45, %c0_46] : memref<1x32x128xbf16, #tpu.memory_space<vmem>>, vector<1x32x128xbf16>
    %137 = vector.shape_cast %136 : vector<1x32x128xbf16> to vector<32x128xbf16>
    %cst_47 = arith.constant dense<0.000000e+00> : vector<16x128xf32>
    %138 = tpu.matmul %135, %137, %cst_47 {dimension_numbers = #tpu.dot_dimension_numbers<[1], [0], [0], [1], [0, 0, 1, 1], [], []>} : vector<16x32xbf16>, vector<32x128xbf16>, vector<16x128xf32> -> vector<16x128xf32>
    %c0_48 = arith.constant 0 : index
    %c0_49 = arith.constant 0 : index
    %c0_50 = arith.constant 0 : index
    %139 = vector.load %arg10[%c0_48, %c0_49, %c0_50] : memref<1x1x128xf32, #tpu.memory_space<vmem>>, vector<1x1x128xf32>
    %140 = vector.shape_cast %139 : vector<1x1x128xf32> to vector<1x128xf32>
    %141 = vector.broadcast %140 : vector<1x128xf32> to vector<16x128xf32>
    %142 = arith.addf %138, %141 : vector<16x128xf32>
    %cst_51 = arith.constant 0.000000e+00 : f32
    %143 = vector.broadcast %cst_51 : f32 to vector<16x128xf32>
    %144 = arith.maximumf %142, %143 : vector<16x128xf32>
    %145 = arith.truncf %144 : vector<16x128xf32> to vector<16x128xbf16>
    %c0_52 = arith.constant 0 : index
    %c0_53 = arith.constant 0 : index
    %c0_54 = arith.constant 0 : index
    %146 = vector.load %arg11[%c0_52, %c0_53, %c0_54] : memref<1x128x32xbf16, #tpu.memory_space<vmem>>, vector<1x128x32xbf16>
    %147 = vector.shape_cast %146 : vector<1x128x32xbf16> to vector<128x32xbf16>
    %cst_55 = arith.constant dense<0.000000e+00> : vector<16x32xf32>
    %148 = tpu.matmul %145, %147, %cst_55 {dimension_numbers = #tpu.dot_dimension_numbers<[1], [0], [0], [1], [0, 0, 1, 1], [], []>} : vector<16x128xbf16>, vector<128x32xbf16>, vector<16x32xf32> -> vector<16x32xf32>
    %c0_56 = arith.constant 0 : index
    %c0_57 = arith.constant 0 : index
    %c0_58 = arith.constant 0 : index
    %149 = vector.load %arg12[%c0_56, %c0_57, %c0_58] : memref<1x1x32xf32, #tpu.memory_space<vmem>>, vector<1x1x32xf32>
    %150 = vector.shape_cast %149 : vector<1x1x32xf32> to vector<1x32xf32>
    %151 = vector.broadcast %150 : vector<1x32xf32> to vector<16x32xf32>
    %152 = arith.addf %148, %151 : vector<16x32xf32>
    %153 = arith.addf %152, %134 : vector<16x32xf32>
    %c0_59 = arith.constant 0 : index
    %c0_60 = arith.constant 0 : index
    %c0_61 = arith.constant 0 : index
    %154 = vector.load %arg13[%c0_59, %c0_60, %c0_61] : memref<1x1x32xf32, #tpu.memory_space<vmem>>, vector<1x1x32xf32>
    %155 = vector.shape_cast %154 : vector<1x1x32xf32> to vector<1x32xf32>
    %c0_62 = arith.constant 0 : index
    %c0_63 = arith.constant 0 : index
    %c0_64 = arith.constant 0 : index
    %156 = vector.load %arg14[%c0_62, %c0_63, %c0_64] : memref<1x1x32xf32, #tpu.memory_space<vmem>>, vector<1x1x32xf32>
    %157 = vector.shape_cast %156 : vector<1x1x32xf32> to vector<1x32xf32>
    %cst_65 = arith.constant dense<0.000000e+00> : vector<16xf32>
    %158 = vector.multi_reduction <add>, %153, %cst_65 [1] : vector<16x32xf32> to vector<16xf32>
    %159 = vector.shape_cast %158 : vector<16xf32> to vector<16x1xf32>
    %cst_66 = arith.constant 3.200000e+01 : f32
    %160 = vector.broadcast %cst_66 : f32 to vector<16x1xf32>
    %161 = arith.divf %159, %160 : vector<16x1xf32>
    %162 = vector.broadcast %161 : vector<16x1xf32> to vector<16x32xf32>
    %163 = arith.subf %153, %162 : vector<16x32xf32>
    %164 = arith.mulf %163, %163 : vector<16x32xf32>
    %cst_67 = arith.constant dense<0.000000e+00> : vector<16xf32>
    %165 = vector.multi_reduction <add>, %164, %cst_67 [1] : vector<16x32xf32> to vector<16xf32>
    %166 = vector.shape_cast %165 : vector<16xf32> to vector<16x1xf32>
    %cst_68 = arith.constant 3.200000e+01 : f32
    %167 = vector.broadcast %cst_68 : f32 to vector<16x1xf32>
    %168 = arith.divf %166, %167 : vector<16x1xf32>
    %169 = vector.broadcast %161 : vector<16x1xf32> to vector<16x32xf32>
    %170 = arith.subf %153, %169 : vector<16x32xf32>
    %cst_69 = arith.constant 9.99999974E-6 : f32
    %171 = vector.broadcast %cst_69 : f32 to vector<16x1xf32>
    %172 = arith.addf %168, %171 : vector<16x1xf32>
    %173 = math.rsqrt %172 : vector<16x1xf32>
    %174 = vector.broadcast %173 : vector<16x1xf32> to vector<16x32xf32>
    %175 = arith.mulf %170, %174 : vector<16x32xf32>
    %176 = vector.broadcast %155 : vector<1x32xf32> to vector<16x32xf32>
    %177 = arith.mulf %175, %176 : vector<16x32xf32>
    %178 = vector.broadcast %157 : vector<1x32xf32> to vector<16x32xf32>
    %179 = arith.addf %177, %178 : vector<16x32xf32>
    %180 = vector.shape_cast %179 : vector<16x32xf32> to vector<2x8x32xf32>
    %c0_70 = arith.constant 0 : index
    %c0_71 = arith.constant 0 : index
    %c0_72 = arith.constant 0 : index
    %181 = vector.load %arg15[%c0_70, %c0_71, %c0_72] : memref<2x8x32xf32, #tpu.memory_space<vmem>>, vector<2x8x32xf32>
    tpu.vector_store %arg15[%c0_70, %c0_71, %c0_72], %180 {strides = array<i32>} : memref<2x8x32xf32, #tpu.memory_space<vmem>>, vector<2x8x32xf32>,
    return
  }
  func.func @transform_0(%arg0: i32, %arg1: i32) -> (i32, i32, i32) {
    %c0_i32 = arith.constant 0 : i32
    %c0_i32_0 = arith.constant 0 : i32
    %c0_i32_1 = arith.constant 0 : i32
    return %arg0, %c0_i32, %c0_i32_0 : i32, i32, i32
  }
  func.func @transform_1(%arg0: i32, %arg1: i32) -> (i32, i32, i32) {
    %c0_i32 = arith.constant 0 : i32
    %c0_i32_0 = arith.constant 0 : i32
    %c0_i32_1 = arith.constant 0 : i32
    return %arg0, %c0_i32, %c0_i32_0 : i32, i32, i32
  }
  func.func @transform_2(%arg0: i32, %arg1: i32) -> (i32, i32, i32) {
    %c0_i32 = arith.constant 0 : i32
    %c0_i32_0 = arith.constant 0 : i32
    %c0_i32_1 = arith.constant 0 : i32
    return %arg1, %c0_i32, %c0_i32_0 : i32, i32, i32
  }
  func.func @transform_3(%arg0: i32, %arg1: i32) -> (i32, i32, i32) {
    %c0_i32 = arith.constant 0 : i32
    %c0_i32_0 = arith.constant 0 : i32
    %c0_i32_1 = arith.constant 0 : i32
    return %arg1, %c0_i32, %c0_i32_0 : i32, i32, i32
  }
  func.func @transform_4(%arg0: i32, %arg1: i32) -> (i32, i32, i32) {
    %c0_i32 = arith.constant 0 : i32
    %c0_i32_0 = arith.constant 0 : i32
    %c0_i32_1 = arith.constant 0 : i32
    return %arg1, %c0_i32, %c0_i32_0 : i32, i32, i32
  }
  func.func @transform_5(%arg0: i32, %arg1: i32) -> (i32, i32, i32) {
    %c0_i32 = arith.constant 0 : i32
    %c0_i32_0 = arith.constant 0 : i32
    %c0_i32_1 = arith.constant 0 : i32
    return %arg1, %c0_i32, %c0_i32_0 : i32, i32, i32
  }
  func.func @transform_6(%arg0: i32, %arg1: i32) -> (i32, i32, i32) {
    %c0_i32 = arith.constant 0 : i32
    %c0_i32_0 = arith.constant 0 : i32
    %c0_i32_1 = arith.constant 0 : i32
    return %arg1, %c0_i32, %c0_i32_0 : i32, i32, i32
  }
  func.func @transform_7(%arg0: i32, %arg1: i32) -> (i32, i32, i32) {
    %c0_i32 = arith.constant 0 : i32
    %c0_i32_0 = arith.constant 0 : i32
    %c0_i32_1 = arith.constant 0 : i32
    return %arg1, %c0_i32, %c0_i32_0 : i32, i32, i32
  }
  func.func @transform_8(%arg0: i32, %arg1: i32) -> (i32, i32, i32) {
    %c0_i32 = arith.constant 0 : i32
    %c0_i32_0 = arith.constant 0 : i32
    %c0_i32_1 = arith.constant 0 : i32
    return %arg1, %c0_i32, %c0_i32_0 : i32, i32, i32
  }
  func.func @transform_9(%arg0: i32, %arg1: i32) -> (i32, i32, i32) {
    %c0_i32 = arith.constant 0 : i32
    %c0_i32_0 = arith.constant 0 : i32
    %c0_i32_1 = arith.constant 0 : i32
    return %arg1, %c0_i32, %c0_i32_0 : i32, i32, i32
  }
  func.func @transform_10(%arg0: i32, %arg1: i32) -> (i32, i32, i32) {
    %c0_i32 = arith.constant 0 : i32
    %c0_i32_0 = arith.constant 0 : i32
    %c0_i32_1 = arith.constant 0 : i32
    return %arg1, %c0_i32, %c0_i32_0 : i32, i32, i32
  }
  func.func @transform_11(%arg0: i32, %arg1: i32) -> (i32, i32, i32) {
    %c0_i32 = arith.constant 0 : i32
    %c0_i32_0 = arith.constant 0 : i32
    %c0_i32_1 = arith.constant 0 : i32
    return %arg1, %c0_i32, %c0_i32_0 : i32, i32, i32
  }
  func.func @transform_12(%arg0: i32, %arg1: i32) -> (i32, i32, i32) {
    %c0_i32 = arith.constant 0 : i32
    %c0_i32_0 = arith.constant 0 : i32
    %c0_i32_1 = arith.constant 0 : i32
    return %arg1, %c0_i32, %c0_i32_0 : i32, i32, i32
  }
  func.func @transform_13(%arg0: i32, %arg1: i32) -> (i32, i32, i32) {
    %c0_i32 = arith.constant 0 : i32
    %c0_i32_0 = arith.constant 0 : i32
    %c0_i32_1 = arith.constant 0 : i32
    return %arg0, %c0_i32, %c0_i32_0 : i32, i32, i32
  }
  func.func @transform_14(%arg0: i32, %arg1: i32) -> (i32, i32, i32, i32) {
    %c0_i32 = arith.constant 0 : i32
    %c0_i32_0 = arith.constant 0 : i32
    %c0_i32_1 = arith.constant 0 : i32
    %c0_i32_2 = arith.constant 0 : i32
    return %arg0, %c0_i32, %c0_i32_0, %c0_i32_1 : i32, i32, i32, i32
  }
}

</mosaic_0001>

<bundles_post_ra>
// kernel: tpu_custom_call.1
= control target key start
LH: loop header
LB: loop body
LE: loop exit
PB: predicated region body
PF: predicated region fallthrough
CT: control target
= control target key end

     0   :  { %s3232_s0 = inlined_call_operand.vmem [shape: f32[2,8,32], index: 0, kind: input, shape index: {}]   ;;  %s3233_s1 = inlined_call_operand.vmem [shape: f32[2,1,8], index: 1, kind: input, shape index: {}]   ;;  %s3234_s2 = inlined_call_operand.vmem [shape: bf16[2,32,96], index: 2, kind: input, shape index: {}]   ;;  %s3235_s3 = inlined_call_operand.vmem [shape: bf16[2,32,32], index: 3, kind: input, shape index: {}]   ;;  %s3236_s4 = inlined_call_operand.vmem [shape: f32[2,1,32], index: 4, kind: input, shape index: {}]   ;;  %s3237_s5 = inlined_call_operand.vmem [shape: f32[2,1,32], index: 5, kind: input, shape index: {}]   ;;  %s3238_s6 = inlined_call_operand.vmem [shape: f32[2,1,32], index: 6, kind: input, shape index: {}]   ;;  %s3239_s7 = inlined_call_operand.vmem [shape: bf16[2,32,128], index: 7, kind: input, shape index: {}]   ;;  %s3240_s8 = inlined_call_operand.vmem [shape: f32[2,1,128], index: 8, kind: input, shape index: {}]   ;;  %s3241_s9 = inlined_call_operand.vmem [shape: bf16[2,128,32], index: 9, kind: input, shape index: {}]   ;;  %s3242_s10 = inlined_call_operand.vmem [shape: f32[2,1,32], index: 10, kind: input, shape index: {}]   ;;  %s3243_s11 = inlined_call_operand.vmem [shape: f32[2,1,32], index: 11, kind: input, shape index: {}]   ;;  %s3244_s12 = inlined_call_operand.vmem [shape: f32[2,1,32], index: 12, kind: input, shape index: {}]   ;;  %s3245_s13 = inlined_call_operand.hbm [shape: f32[2,8,32], index: 13, kind: output, shape index: {0}]   ;;  %s3246_s14 = inlined_call_operand.hbm [shape: f32[2,4,8,8], index: 14, kind: output, shape index: {1}]  }
   0x1   :  { %3250 = sst [smem:[#allocation11_spill]] %s3233_s1 }
   0x2   :  { %3251 = sst [smem:[#allocation12_spill]] %s3234_s2 }
   0x3   :  { %3252 = sst [smem:[#allocation13_spill]] %s3235_s3 }
   0x4   :  { %3253 = sst [smem:[#allocation14_spill]] %s3245_s13 }
   0x5   :  { %3254 = sst [smem:[#allocation15_spill]] %s3246_s14 }
   0x6   :  { %20 = vsyncpa [#allocation3], 0 }
   0x7   :  { %21 = vsyncpa [#allocation5], 0  ;;  %s2817_s29 = smov 0   ;;  %s2819_s30 = smov 0  }
   0x8   :  { %s2821_s15 = smov 0  }
   0x9 LB: > { %3255 = sst [smem:[#allocation8_spill]] %s2717_s30  ;;  %s36_s17 = sadd.s32 1, %s2717_s30  ;;  %s2721_s15 = sphi %s2821_s15, %s27_s15   ;;  %s2717_s30 = sphi %s2819_s30, %s3271_s30   ;;  %s2713_s29 = sphi %s2817_s29, %s3270_s29  }
   0xa   : > { %3256 = sst [smem:[#allocation9_spill]] %s2721_s15  ;;  %p37_p0 = scmp.ge.s32.totalorder %s36_s17, 2 }
   0xb   : > { %p2266_p1 = scmp.ge.s32.totalorder %s2721_s15, 1  ;;  %p536_p2 = scmp.lt.s32.totalorder %s2721_s15, 3 }
   0xc   : > { %s3273_s17 = smov (%p37_p0, %s36_s17), 0 }
   0xd   : > { %3257 = sst [smem:[#allocation10_spill]] %s3273_s17  ;;  %p537_p3 = pnand %p2266_p1, %p536_p2 }
   0xe   : > { %p633_p4 = scmp.lt.s32.totalorder (!%p537_p3), %s2713_s29, 1  ;;  %s3258_s2 = sld [smem:[#allocation12_spill]] (!%p537_p3) }
   0xf   : > { %540 = sbr.rel (%p537_p3) target bundleno = 3995 (0xf9b), region = 72  ;;  %s3259_s3 = sld [smem:[#allocation13_spill]] (!%p537_p3) }
  0x10   : > { %p2275_p5 = scmp.ne.s32.totalorder (!%p537_p3), %s2713_s29, 0 }
  0x14   : > { %s2840_s18 = scalar_select %p633_p4, %s2713_s29, 1 }
  0x16   : > { %s2325_s19 = sshll.u32 %s2840_s18, 4  ;;  %s659_s22 = scalar_lea.vmem %s3240_s8, %s2840_s18 }
  0x17   : > { %s637_s25 = scalar_lea.vmem %s3258_s2, %s2325_s19  ;;  %s2853_s28 = scalar_lea.vmem %s3259_s3, %s2325_s19 }
  0x18   : > { %s2866_s21 = scalar_lea.vmem %s3239_s7, %s2325_s19  ;;  %s2328_s26 = sshll.u32 %s2840_s18, 6 }
  0x19   : > { %s667_s3 = scalar_lea.vmem %s3242_s10, %s2840_s18  ;;  %s2880_s30 = scalar_lea.vmem %s3241_s9, %s2328_s26 }
  0x1a   : > { %s670_s1 = scalar_lea.vmem %s3243_s11, %s2840_s18  ;;  %s673_s15 = scalar_lea.vmem %s3244_s12, %s2840_s18 }
  0x1b   : > { %680 = sbr.rel (%p2275_p5) target bundleno = 34 (0x22), region = 76 }
  0x20   : > { %v681_v0 = vld [vmem:[%s3232_s0] sm:$0xff]  ;;  %vm683_vm0 = vcmask 261120   ;;  %v682_v1 = vld [vmem:[%s3232_s0 + $0x8] sm:$0xff] }
  0x21   : > { %684 = vst.msk [vmem:[#allocation2] sm:$0xff] %vm683_vm0, %v681_v0  ;;  %685 = vst.msk [vmem:[#allocation2 + $0x8] sm:$0xff] %vm683_vm0, %v682_v1 }
  0x22 PF: > { %v2574_v2 = vld [vmem:[%s637_s25 + $0x8] sm:$0xff]   ;;  %v2723_v3 = vmov 0.0   ;;  %v2575_v4 = vld [vmem:[%s637_s25] sm:$0xff]   ;;  %vm2724_vm1 = vmmov 0   ;;  %vm705_vm2 = vcmask 261120   ;;  %s2725_s25 = smov 96  }
  0x23   : > { %2379 = vmatprep.subr.bf16.mxu0 %v2723_v3  ;;  %2399 = vmatprep.subr.bf16.mxu1 %v2723_v3  ;;  %vm769_vm3 = vcmask 64512   ;;  %s3260_s17 = sld [smem:[#allocation11_spill]]  ;;  %s2726_s19 = smov 64   ;;  %vm894_vm4 = vcmask 1043456  }
  0x24   : > { %2380 = vmatpush3.bf16.msra.mxu0 %v2574_v2  ;;  %2383 = vmatprep.mubr.msk.bf16.mxu0 %vm2724_vm1, %v2723_v3  ;;  %s2727_s20 = smov 88   ;;  %s2728_s23 = smov 120  }
  0x25   : > { %2381 = vmatprep.subr.bf16.mxu0 %v2723_v3  ;;  %2401 = vmatprep.mubr.msk.bf16.mxu1 %vm2724_vm1, %v2723_v3  ;;  %s2729_s24 = smov 56   ;;  %s2730_s2 = smov 80  }
  0x26   : > { %s2731_s27 = smov 112   ;;  %s2733_s26 = smov 72  }
  0x27   : > { %s2734_s16 = smov 104   ;;  %s2735_s13 = smov 40  }
  0x28   : > { %v2901_v5 = vld [vmem:[#allocation2] sm:$0xff]  ;;  %v2903_v6 = vld [vmem:[#allocation2 + $0x8] sm:$0xff]  ;;  %2382 = vmatpush3.bf16.msra.mxu0 %v2575_v4  ;;  %p2297_p6 = scmp.ne.s32.totalorder %s2713_s29, 1 }
  0x29   : > { %v688_v7 = vpack.c.bf16 %v2903_v6, %v2901_v5  ;;  %2387 = vmatprep.subr.bf16.mxu0 %v2723_v3  ;;  %v2935_v18 = vld [vmem:[%s3260_s17] ss:$0 sm:$0xff]  ;;  %v2942_v25 = vld [vmem:[%s3260_s17 + $0x1] ss:$0 sm:$0xff] }
  0x2b   : > { %2384 = vmatmul.mubr.msk.bf16.vlgmr.msra.gmra.mxu0 %vm705_vm2, %v688_v7 }
  0x2c   : > { %2389 = vmatprep.mubr.msk.bf16.mxu0 %vm2724_vm1, %v2723_v3 }
  0xeb   : > { %v743_v8 = vpop.f32.mrf.mxu0 }
  0xec   : > { %v2914_v9 = vpack.c.bf16 %v743_v8, %v743_v8 }
  0xed   : > { %v2385_v10 = vpop.f32.mrf.mxu0 }
  0xee   : > { %767 = vrot.lane.b32.xlu0 %v2914_v9, %s2725_s25 }
  0xef   : > { %v746_v11 = vpop.f32.mrf.mxu0 }
  0xf0   : > { %v2917_v12 = vpack.c.bf16 %v746_v11, %v746_v11 }
  0xf1   : > { %v2386_v13 = vpop.f32.mrf.mxu0 }
  0xf2   : > { %817 = vrot.lane.b32.xlu0 %v2917_v12, %s2725_s25  ;;  %s2732_s25 = smov 48  }
 0x160   : > { %v768_v14 = vpop.permute.xlu0 %767 }
 0x161   : > { %v774_v15 = vsel %vm769_vm3, %v768_v14, 0 }
 0x162   : > { %2388 = vmatpush3.bf16.xpose.msra.mxu0 %v774_v15 }
 0x163   : > { %2393 = vmatprep.subr.bf16.mxu0 %v2723_v3 }
 0x164   : > { %v818_v16 = vpop.permute.xlu0 %817 }
 0x165   : > { %v823_v17 = vsel %vm769_vm3, %v818_v16, 0 }
 0x169   : > { %2390 = vmatmul.mubr.msk.bf16.vlgmr.msra.gmra.mxu0 %vm769_vm3, %v2914_v9 }
 0x16a   : > { %2394 = vmatpush3.bf16.xpose.msra.mxu0 %v823_v17  ;;  %2395 = vmatprep.mubr.msk.bf16.mxu0 %vm2724_vm1, %v2723_v3 }
 0x16b   : > { %2405 = vmatprep.subr.bf16.mxu0 %v2723_v3 }
 0x171   : > { %2396 = vmatmul.mubr.msk.bf16.vlgmr.msra.gmra.mxu0 %vm769_vm3, %v2917_v12 }
 0x172   : > { %2407 = vmatprep.mubr.msk.bf16.mxu0 %vm2724_vm1, %v2723_v3 }
 0x229   : > { %v810_v19 = vpop.f32.mrf.mxu0 }
 0x22a   : > { %v811_v20 = vadd.f32 %v2935_v18, %v810_v19 }
 0x22b   : > { %v2391_v21 = vpop.f32.mrf.mxu0 }
 0x22c   : > { %v865_v22 = vsel %vm769_vm3, %v811_v20, -inf }
 0x22d   : > { %866 = vmax.xlane.f32.xlu1 %v865_v22  ;;  %v813_v23 = vpop.f32.mrf.mxu0 }
 0x22f   : > { %v2392_v24 = vpop.f32.mrf.mxu0 }
 0x231   : > { %v859_v26 = vpop.f32.mrf.mxu0 }
 0x232   : > { %v860_v27 = vadd.f32 %v2942_v25, %v859_v26 }
 0x233   : > { %v2397_v28 = vpop.f32.mrf.mxu0 }
 0x234   : > { %v868_v29 = vsel %vm769_vm3, %v860_v27, -inf }
 0x235   : > { %869 = vmax.xlane.f32.xlu1 %v868_v29  ;;  %v862_v30 = vpop.f32.mrf.mxu0 }
 0x237   : > { %v2398_v31 = vpop.f32.mrf.mxu0 }
 0x246   : > { %889 = vrot.lane.b32.xlu1 %v2914_v9, %s2726_s19 }
 0x24a   : > { %938 = vrot.lane.b32.xlu1 %v2917_v12, %s2726_s19 }
 0x24e   : > { %988 = vrot.lane.b32.xlu1 %v2914_v9, %s2727_s20 }
 0x2b6   : > { %v867_v32 = vpop.xlane.xlu1 %866 }
 0x2b7   : > { %v871_v33 = vsub.f32 %v811_v20, %v867_v32 }
 0x2b9   : > { %v873_v34 = vmul.f32 1.442695, %v871_v33 }
 0x2bb   : > { %2576 = vpow2.f32 %v873_v34 }
 0x2be   : > { %v870_v35 = vpop.xlane.xlu1 %869 }
 0x2bf   : > { %v872_v36 = vsub.f32 %v860_v27, %v870_v35 }
 0x2c1   : > { %v875_v37 = vmul.f32 1.442695, %v872_v36 }
 0x2c2   : > { %v890_v38 = vpop.permute.xlu1 %889 }
 0x2c3   : > { %2578 = vpow2.f32 %v875_v37  ;;  %v896_v39 = vsel %vm894_vm4, %v890_v38, 0 }
 0x2c4   : > { %2400 = vmatpush3.bf16.msra.mxu1 %v896_v39 }
 0x2c5   : > { %2411 = vmatprep.subr.bf16.mxu1 %v2723_v3 }
 0x2c6   : > { %v939_v40 = vpop.permute.xlu1 %938 }
 0x2c7   : > { %v944_v41 = vsel %vm894_vm4, %v939_v40, 0 }
 0x2c8   : > { %v2577_v42 = vpop.eup %2576  ;;  %2406 = vmatpush3.bf16.msra.mxu0 %v944_v41 }
 0x2c9   : > { %v877_v43 = vsel %vm769_vm3, %v2577_v42, 0.0  ;;  %2417 = vmatprep.subr.bf16.mxu0 %v2723_v3 }
 0x2ca   : > { %878 = vadd.xlane.f32.xlu0 %v877_v43  ;;  %v989_v47 = vpop.permute.xlu1 %988 }
 0x2cb   : > { %v994_v52 = vsel %vm769_vm3, %v989_v47, 0 }
 0x2d0   : > { %v2579_v44 = vpop.eup %2578 }
 0x2d1   : > { %v880_v45 = vsel %vm769_vm3, %v2579_v44, 0.0 }
 0x2d2   : > { %881 = vadd.xlane.f32.xlu1 %v880_v45 }
 0x2e0   : > { %986 = vrot.lane.b32.xlu0 %v2914_v9, %s2728_s23 }
 0x2e3   : > { %1038 = vrot.lane.b32.xlu1 %v2917_v12, %s2727_s20 }
 0x2e7   : > { %1036 = vrot.lane.b32.xlu1 %v2917_v12, %s2728_s23 }
 0x353   : > { %v879_v46 = vpop.xlane.xlu0 %878 }
 0x354   : > { %2580 = vrcp.f32 %v879_v46 }
 0x357   : > { %v987_v57 = vpop.permute.xlu0 %986 }
 0x35b   : > { %v882_v48 = vpop.xlane.xlu1 %881 }
 0x35c   : > { %2582 = vrcp.f32 %v882_v48 }
 0x35f   : > { %v1039_v55 = vpop.permute.xlu1 %1038 }
 0x360   : > { %v1044_v58 = vsel %vm769_vm3, %v1039_v55, 0 }
 0x361   : > { %v2581_v49 = vpop.eup %2580 }
 0x362   : > { %v2958_v50 = vmul.f32 %v2581_v49, %v2577_v42 }
 0x363   : > { %v1037_v59 = vpop.permute.xlu1 %1036 }
 0x364   : > { %v887_v51 = vpack.c.bf16 %v2958_v50, %v2958_v50 }
 0x366   : > { %2402 = vmatmul.mubr.msk.bf16.vlgmr.msra.gmra.mxu1 %vm769_vm3, %v887_v51 }
 0x367   : > { %2412 = vmatpush3.bf16.xpose.msra.mxu1 %v994_v52  ;;  %2413 = vmatprep.mubr.msk.bf16.mxu1 %vm2724_vm1, %v2723_v3 }
 0x368   : > { %2423 = vmatprep.subr.bf16.mxu1 %v2723_v3 }
 0x369   : > { %v2583_v53 = vpop.eup %2582 }
 0x36a   : > { %v2967_v54 = vmul.f32 %v2583_v53, %v2579_v44 }
 0x36c   : > { %v888_v56 = vpack.c.bf16 %v2967_v54, %v2967_v54 }
 0x36e   : > { %2408 = vmatmul.mubr.msk.bf16.vlgmr.msra.gmra.mxu0 %vm769_vm3, %v888_v56  ;;  %2414 = vmatmul.mubr.msk.bf16.vlgmr.msra.gmra.mxu1 %vm769_vm3, %v987_v57 }
 0x36f   : > { %2418 = vmatpush3.bf16.xpose.msra.mxu0 %v1044_v58  ;;  %2419 = vmatprep.mubr.msk.bf16.mxu0 %vm2724_vm1, %v2723_v3 }
 0x370   : > { %2429 = vmatprep.subr.bf16.mxu0 %v2723_v3  ;;  %2425 = vmatprep.mubr.msk.bf16.mxu1 %vm2724_vm1, %v2723_v3 }
 0x376   : > { %2420 = vmatmul.mubr.msk.bf16.vlgmr.msra.gmra.mxu0 %vm769_vm3, %v1037_v59 }
 0x377   : > { %2431 = vmatprep.mubr.msk.bf16.mxu0 %vm2724_vm1, %v2723_v3 }
 0x426   : > { %v2982_v60 = vpop.f32.mrf.mxu1 }
 0x428   : > { %v2403_v61 = vpop.f32.mrf.mxu1 }
 0x42a   : > { %v935_v62 = vpop.f32.mrf.mxu1 }
 0x42c   : > { %v2404_v63 = vpop.f32.mrf.mxu1 }
 0x42e   : > { %v2984_v0 = vpop.f32.mrf.mxu0  ;;  %v1030_v1 = vpop.f32.mrf.mxu1 }
 0x42f   : > { %v1031_v2 = vadd.f32 %v2935_v18, %v1030_v1 }
 0x430   : > { %v2409_v4 = vpop.f32.mrf.mxu0  ;;  %v2415_v7 = vpop.f32.mrf.mxu1 }
 0x431   : > { %v1086_v8 = vsel %vm769_vm3, %v1031_v2, -inf }
 0x432   : > { %1087 = vmax.xlane.f32.xlu1 %v1086_v8  ;;  %v983_v10 = vpop.f32.mrf.mxu0  ;;  %v1033_v11 = vpop.f32.mrf.mxu1 }
 0x434   : > { %v2410_v13 = vpop.f32.mrf.mxu0  ;;  %v2416_v14 = vpop.f32.mrf.mxu1 }
 0x436   : > { %v1080_v15 = vpop.f32.mrf.mxu0 }
 0x437   : > { %v1081_v16 = vadd.f32 %v2942_v25, %v1080_v15 }
 0x438   : > { %v2421_v17 = vpop.f32.mrf.mxu0 }
 0x439   : > { %v1089_v19 = vsel %vm769_vm3, %v1081_v16, -inf }
 0x43a   : > { %1090 = vmax.xlane.f32.xlu0 %v1089_v19  ;;  %v1083_v20 = vpop.f32.mrf.mxu0 }
 0x43c   : > { %v2422_v21 = vpop.f32.mrf.mxu0 }
 0x443   : > { %1110 = vrot.lane.b32.xlu1 %v2914_v9, %s2729_s24 }
 0x447   : > { %1208 = vrot.lane.b32.xlu1 %v2914_v9, %s2730_s2 }
 0x450   : > { %1158 = vrot.lane.b32.xlu0 %v2917_v12, %s2729_s24 }
 0x454   : > { %1206 = vrot.lane.b32.xlu0 %v2914_v9, %s2731_s27 }
 0x4bb   : > { %v1088_v22 = vpop.xlane.xlu1 %1087 }
 0x4bc   : > { %v1092_v23 = vsub.f32 %v1031_v2, %v1088_v22 }
 0x4be   : > { %v1094_v24 = vmul.f32 1.442695, %v1092_v23 }
 0x4bf   : > { %v1111_v26 = vpop.permute.xlu1 %1110 }
 0x4c0   : > { %2584 = vpow2.f32 %v1094_v24  ;;  %v1116_v27 = vsel %vm894_vm4, %v1111_v26, 0 }
 0x4c1   : > { %2424 = vmatpush3.bf16.msra.mxu1 %v1116_v27 }
 0x4c2   : > { %2435 = vmatprep.subr.bf16.mxu1 %v2723_v3 }
 0x4c3   : > { %v1091_v28 = vpop.xlane.xlu0 %1090  ;;  %v1209_v37 = vpop.permute.xlu1 %1208 }
 0x4c4   : > { %v1093_v29 = vsub.f32 %v1081_v16, %v1091_v28  ;;  %v1214_v43 = vsel %vm769_vm3, %v1209_v37, 0 }
 0x4c6   : > { %v1096_v30 = vmul.f32 1.442695, %v1093_v29 }
 0x4c7   : > { %v1159_v31 = vpop.permute.xlu0 %1158 }
 0x4c8   : > { %2586 = vpow2.f32 %v1096_v30  ;;  %v1164_v32 = vsel %vm894_vm4, %v1159_v31, 0 }
 0x4c9   : > { %2430 = vmatpush3.bf16.msra.mxu0 %v1164_v32 }
 0x4ca   : > { %2441 = vmatprep.subr.bf16.mxu0 %v2723_v3 }
 0x4cb   : > { %v1207_v48 = vpop.permute.xlu0 %1206 }
 0x4cd   : > { %v2585_v33 = vpop.eup %2584 }
 0x4ce   : > { %v1098_v34 = vsel %vm769_vm3, %v2585_v33, 0.0 }
 0x4cf   : > { %1099 = vadd.xlane.f32.xlu1 %v1098_v34 }
 0x4d5   : > { %v2587_v35 = vpop.eup %2586 }
 0x4d6   : > { %v1101_v36 = vsel %vm769_vm3, %v2587_v35, 0.0 }
 0x4d7   : > { %1102 = vadd.xlane.f32.xlu1 %v1101_v36 }
 0x4e8   : > { %1258 = vrot.lane.b32.xlu1 %v2917_v12, %s2730_s2 }
 0x4ec   : > { %1256 = vrot.lane.b32.xlu1 %v2917_v12, %s2731_s27 }
 0x558   : > { %v1100_v38 = vpop.xlane.xlu1 %1099 }
 0x559   : > { %2588 = vrcp.f32 %v1100_v38 }
 0x560   : > { %v1103_v39 = vpop.xlane.xlu1 %1102 }
 0x561   : > { %2590 = vrcp.f32 %v1103_v39 }
 0x564   : > { %v1259_v46 = vpop.permute.xlu1 %1258 }
 0x565   : > { %v1264_v49 = vsel %vm769_vm3, %v1259_v46, 0 }
 0x566   : > { %v2589_v40 = vpop.eup %2588 }
 0x567   : > { %v3002_v41 = vmul.f32 %v2589_v40, %v2585_v33 }
 0x568   : > { %v1257_v51 = vpop.permute.xlu1 %1256 }
 0x569   : > { %v1108_v42 = vpack.c.bf16 %v3002_v41, %v3002_v41 }
 0x56b   : > { %2426 = vmatmul.mubr.msk.bf16.vlgmr.msra.gmra.mxu1 %vm769_vm3, %v1108_v42 }
 0x56c   : > { %2436 = vmatpush3.bf16.xpose.msra.mxu1 %v1214_v43  ;;  %2437 = vmatprep.mubr.msk.bf16.mxu1 %vm2724_vm1, %v2723_v3 }
 0x56d   : > { %2447 = vmatprep.subr.bf16.mxu1 %v2723_v3 }
 0x56e   : > { %v2591_v44 = vpop.eup %2590 }
 0x56f   : > { %v3011_v45 = vmul.f32 %v2591_v44, %v2587_v35 }
 0x571   : > { %v1109_v47 = vpack.c.bf16 %v3011_v45, %v3011_v45 }
 0x573   : > { %2432 = vmatmul.mubr.msk.bf16.vlgmr.msra.gmra.mxu0 %vm769_vm3, %v1109_v47  ;;  %2438 = vmatmul.mubr.msk.bf16.vlgmr.msra.gmra.mxu1 %vm769_vm3, %v1207_v48 }
 0x574   : > { %2442 = vmatpush3.bf16.xpose.msra.mxu0 %v1264_v49  ;;  %2443 = vmatprep.mubr.msk.bf16.mxu0 %vm2724_vm1, %v2723_v3 }
 0x575   : > { %2453 = vmatprep.subr.bf16.mxu0 %v2723_v3  ;;  %2449 = vmatprep.mubr.msk.bf16.mxu1 %vm2724_vm1, %v2723_v3 }
 0x57b   : > { %2444 = vmatmul.mubr.msk.bf16.vlgmr.msra.gmra.mxu0 %vm769_vm3, %v1257_v51 }
 0x57c   : > { %2455 = vmatprep.mubr.msk.bf16.mxu0 %vm2724_vm1, %v2723_v3 }
 0x62b   : > { %v3026_v52 = vpop.f32.mrf.mxu1 }
 0x62d   : > { %v2427_v53 = vpop.f32.mrf.mxu1 }
 0x62f   : > { %v1155_v55 = vpop.f32.mrf.mxu1 }
 0x631   : > { %v2428_v56 = vpop.f32.mrf.mxu1 }
 0x633   : > { %v3028_v57 = vpop.f32.mrf.mxu0  ;;  %v1250_v58 = vpop.f32.mrf.mxu1 }
 0x634   : > { %v1251_v59 = vadd.f32 %v2935_v18, %v1250_v58 }
 0x635   : > { %v2433_v61 = vpop.f32.mrf.mxu0  ;;  %v2439_v62 = vpop.f32.mrf.mxu1 }
 0x636   : > { %v1306_v63 = vsel %vm769_vm3, %v1251_v59, -inf }
 0x637   : > { %1307 = vmax.xlane.f32.xlu0 %v1306_v63  ;;  %v1203_v1 = vpop.f32.mrf.mxu0  ;;  %v1253_v2 = vpop.f32.mrf.mxu1 }
 0x639   : > { %v2434_v4 = vpop.f32.mrf.mxu0  ;;  %v2440_v7 = vpop.f32.mrf.mxu1 }
 0x63b   : > { %v1300_v8 = vpop.f32.mrf.mxu0 }
 0x63c   : > { %v1301_v10 = vadd.f32 %v2942_v25, %v1300_v8 }
 0x63d   : > { %v2445_v11 = vpop.f32.mrf.mxu0 }
 0x63e   : > { %v1309_v13 = vsel %vm769_vm3, %v1301_v10, -inf }
 0x63f   : > { %1310 = vmax.xlane.f32.xlu1 %v1309_v13  ;;  %v1303_v14 = vpop.f32.mrf.mxu0 }
 0x641   : > { %v2446_v15 = vpop.f32.mrf.mxu0 }
 0x650   : > { %1330 = vrot.lane.b32.xlu1 %v2914_v9, %s2732_s25 }
 0x654   : > { %1428 = vrot.lane.b32.xlu1 %v2914_v9, %s2733_s26 }
 0x658   : > { %1478 = vrot.lane.b32.xlu1 %v2917_v12, %s2733_s26 }
 0x65c   : > { %1476 = vrot.lane.b32.xlu1 %v2917_v12, %s2734_s16 }
 0x6c0   : > { %v1308_v16 = vpop.xlane.xlu0 %1307 }
 0x6c1   : > { %v1312_v17 = vsub.f32 %v1251_v59, %v1308_v16 }
 0x6c3   : > { %v1314_v19 = vmul.f32 1.442695, %v1312_v17 }
 0x6c5   : > { %2592 = vpow2.f32 %v1314_v19 }
 0x6c8   : > { %v1311_v20 = vpop.xlane.xlu1 %1310 }
 0x6c9   : > { %v1313_v21 = vsub.f32 %v1301_v10, %v1311_v20 }
 0x6cb   : > { %v1316_v22 = vmul.f32 1.442695, %v1313_v21 }
 0x6cc   : > { %v1331_v23 = vpop.permute.xlu1 %1330 }
 0x6cd   : > { %2594 = vpow2.f32 %v1316_v22  ;;  %v1336_v24 = vsel %vm894_vm4, %v1331_v23, 0 }
 0x6ce   : > { %2448 = vmatpush3.bf16.msra.mxu1 %v1336_v24 }
 0x6cf   : > { %2459 = vmatprep.subr.bf16.mxu1 %v2723_v3 }
 0x6d0   : > { %v1429_v36 = vpop.permute.xlu1 %1428 }
 0x6d1   : > { %v1434_v38 = vsel %vm769_vm3, %v1429_v36, 0 }
 0x6d2   : > { %v2593_v26 = vpop.eup %2592 }
 0x6d3   : > { %v1318_v27 = vsel %vm769_vm3, %v2593_v26, 0.0 }
 0x6d4   : > { %1319 = vadd.xlane.f32.xlu0 %v1318_v27  ;;  %v1479_v42 = vpop.permute.xlu1 %1478 }
 0x6d5   : > { %v1484_v46 = vsel %vm769_vm3, %v1479_v42, 0 }
 0x6d8   : > { %v1477_v47 = vpop.permute.xlu1 %1476 }
 0x6da   : > { %v2595_v28 = vpop.eup %2594 }
 0x6db   : > { %v1321_v29 = vsel %vm769_vm3, %v2595_v28, 0.0 }
 0x6dc   : > { %1322 = vadd.xlane.f32.xlu0 %v1321_v29 }
 0x6f2   : > { %1378 = vrot.lane.b32.xlu0 %v2917_v12, %s2732_s25 }
 0x6f6   : > { %1426 = vrot.lane.b32.xlu0 %v2914_v9, %s2734_s16 }
 0x75d   : > { %v1320_v30 = vpop.xlane.xlu0 %1319 }
 0x75e   : > { %2596 = vrcp.f32 %v1320_v30 }
 0x765   : > { %v1323_v31 = vpop.xlane.xlu0 %1322 }
 0x766   : > { %2598 = vrcp.f32 %v1323_v31 }
 0x769   : > { %v1379_v32 = vpop.permute.xlu0 %1378 }
 0x76a   : > { %v1384_v33 = vsel %vm894_vm4, %v1379_v32, 0 }
 0x76b   : > { %v2597_v34 = vpop.eup %2596  ;;  %2454 = vmatpush3.bf16.msra.mxu0 %v1384_v33 }
 0x76c   : > { %v3045_v35 = vmul.f32 %v2597_v34, %v2593_v26  ;;  %2465 = vmatprep.subr.bf16.mxu0 %v2723_v3 }
 0x76d   : > { %v1427_v44 = vpop.permute.xlu0 %1426 }
 0x76e   : > { %v1328_v37 = vpack.c.bf16 %v3045_v35, %v3045_v35 }
 0x770   : > { %2450 = vmatmul.mubr.msk.bf16.vlgmr.msra.gmra.mxu1 %vm769_vm3, %v1328_v37 }
 0x771   : > { %2460 = vmatpush3.bf16.xpose.msra.mxu1 %v1434_v38  ;;  %2461 = vmatprep.mubr.msk.bf16.mxu1 %vm2724_vm1, %v2723_v3 }
 0x772   : > { %2471 = vmatprep.subr.bf16.mxu1 %v2723_v3 }
 0x773   : > { %v2599_v39 = vpop.eup %2598 }
 0x774   : > { %v3055_v40 = vmul.f32 %v2599_v39, %v2595_v28 }
 0x776   : > { %v1329_v43 = vpack.c.bf16 %v3055_v40, %v3055_v40 }
 0x778   : > { %2456 = vmatmul.mubr.msk.bf16.vlgmr.msra.gmra.mxu0 %vm769_vm3, %v1329_v43  ;;  %2462 = vmatmul.mubr.msk.bf16.vlgmr.msra.gmra.mxu1 %vm769_vm3, %v1427_v44 }
 0x779   : > { %2466 = vmatpush3.bf16.xpose.msra.mxu0 %v1484_v46  ;;  %2467 = vmatprep.mubr.msk.bf16.mxu0 %vm2724_vm1, %v2723_v3 }
 0x77a   : > { %2477 = vmatprep.subr.bf16.mxu0 %v2723_v3  ;;  %2473 = vmatprep.mubr.msk.bf16.mxu1 %vm2724_vm1, %v2723_v3 }
 0x780   : > { %2468 = vmatmul.mubr.msk.bf16.vlgmr.msra.gmra.mxu0 %vm769_vm3, %v1477_v47 }
 0x781   : > { %2479 = vmatprep.mubr.msk.bf16.mxu0 %vm2724_vm1, %v2723_v3 }
 0x830   : > { %v3070_v48 = vpop.f32.mrf.mxu1 }
 0x832   : > { %v2451_v49 = vpop.f32.mrf.mxu1 }
 0x834   : > { %v1375_v51 = vpop.f32.mrf.mxu1 }
 0x836   : > { %v2452_v53 = vpop.f32.mrf.mxu1 }
 0x838   : > { %v3072_v55 = vpop.f32.mrf.mxu0  ;;  %v1470_v56 = vpop.f32.mrf.mxu1 }
 0x839   : > { %v1471_v58 = vadd.f32 %v2935_v18, %v1470_v56 }
 0x83a   : > { %v2457_v59 = vpop.f32.mrf.mxu0  ;;  %v2463_v61 = vpop.f32.mrf.mxu1 }
 0x83b   : > { %v1526_v62 = vsel %vm769_vm3, %v1471_v58, -inf }
 0x83c   : > { %1527 = vmax.xlane.f32.xlu0 %v1526_v62  ;;  %v1423_v63 = vpop.f32.mrf.mxu0  ;;  %v1473_v1 = vpop.f32.mrf.mxu1 }
 0x83e   : > { %v2458_v2 = vpop.f32.mrf.mxu0  ;;  %v2464_v4 = vpop.f32.mrf.mxu1 }
 0x840   : > { %v1520_v7 = vpop.f32.mrf.mxu0 }
 0x841   : > { %v1521_v8 = vadd.f32 %v2942_v25, %v1520_v7 }
 0x842   : > { %v2469_v10 = vpop.f32.mrf.mxu0 }
 0x843   : > { %v1529_v11 = vsel %vm769_vm3, %v1521_v8, -inf }
 0x844   : > { %1530 = vmax.xlane.f32.xlu1 %v1529_v11  ;;  %v1523_v13 = vpop.f32.mrf.mxu0 }
 0x846   : > { %v2470_v14 = vpop.f32.mrf.mxu0 }
 0x855   : > { %1550 = vrot.lane.b32.xlu1 %v2914_v9, %s2735_s13 }
 0x8c5   : > { %v1528_v18 = vpop.xlane.xlu0 %1527 }
 0x8c6   : > { %v1532_v15 = vsub.f32 %v1471_v58, %v1528_v18 }
 0x8c8   : > { %v1534_v16 = vmul.f32 1.442695, %v1532_v15 }
 0x8ca   : > { %2600 = vpow2.f32 %v1534_v16 }
 0x8cd   : > { %v1531_v17 = vpop.xlane.xlu1 %1530 }
 0x8ce   : > { %v1533_v19 = vsub.f32 %v1521_v8, %v1531_v17 }
 0x8d0   : > { %v1536_v20 = vmul.f32 1.442695, %v1533_v19 }
 0x8d1   : > { %v1551_v21 = vpop.permute.xlu1 %1550 }
 0x8d2   : > { %2602 = vpow2.f32 %v1536_v20  ;;  %v1556_v25 = vsel %vm894_vm4, %v1551_v21, 0 }
 0x8d3   : > { %2472 = vmatpush3.bf16.msra.mxu1 %v1556_v25 }
 0x8d7   : > { %v2601_v22 = vpop.eup %2600 }
 0x8d8   : > { %v1538_v23 = vsel %vm769_vm3, %v2601_v22, 0.0 }
 0x8d9   : > { %1539 = vadd.xlane.f32.xlu0 %v1538_v23 }
 0x8df   : > { %v2603_v24 = vpop.eup %2602 }
 0x8e0   : > { %v1541_v26 = vsel %vm769_vm3, %v2603_v24, 0.0 }
 0x8e1   : > { %1542 = vadd.xlane.f32.xlu0 %v1541_v26 }
 0x8f7   : > { %1598 = vrot.lane.b32.xlu0 %v2917_v12, %s2735_s13 }
 0x962   : > { %v1540_v9 = vpop.xlane.xlu0 %1539 }
 0x963   : > { %2604 = vrcp.f32 %v1540_v9 }
 0x96a   : > { %v1543_v27 = vpop.xlane.xlu0 %1542 }
 0x96b   : > { %2606 = vrcp.f32 %v1543_v27 }
 0x96e   : > { %v1599_v28 = vpop.permute.xlu0 %1598 }
 0x96f   : > { %v1604_v29 = vsel %vm894_vm4, %v1599_v28, 0 }
 0x970   : > { %v2605_v30 = vpop.eup %2604  ;;  %2478 = vmatpush3.bf16.msra.mxu0 %v1604_v29 }
 0x971   : > { %v1546_v31 = vmul.f32 %v2605_v30, %v2601_v22 }
 0x973   : > { %v1548_v32 = vpack.c.bf16 %v1546_v31, %v1546_v31 }
 0x975   : > { %2474 = vmatmul.mubr.msk.bf16.vlgmr.msra.gmra.mxu1 %vm769_vm3, %v1548_v32 }
 0x978   : > { %v2607_v33 = vpop.eup %2606 }
 0x979   : > { %v1547_v34 = vmul.f32 %v2607_v33, %v2603_v24 }
 0x97b   : > { %v1549_v36 = vpack.c.bf16 %v1547_v34, %v1547_v34 }
 0x97d   : > { %2480 = vmatmul.mubr.msk.bf16.vlgmr.msra.gmra.mxu0 %vm769_vm3, %v1549_v36 }
 0xa35   : > { %v1592_v37 = vpop.f32.mrf.mxu1 }
 0xa37   : > { %v2475_v12 = vpop.f32.mrf.mxu1 }
 0xa39   : > { %v1595_v38 = vpop.f32.mrf.mxu1 }
 0xa3b   : > { %v2476_v39 = vpop.f32.mrf.mxu1 }
 0xa3d   : > { %v1640_v42 = vpop.f32.mrf.mxu0 }
 0xa3f   : > { %v2481_v43 = vpop.f32.mrf.mxu0  ;;  %1649 = sbr.rel (%p2297_p6) target bundleno = 2632 (0xa48), region = 80 }
 0xa41   : > { %v1643_v44 = vpop.f32.mrf.mxu0 }
 0xa43   : > { %v2482_v46 = vpop.f32.mrf.mxu0 }
 0xa44   : > { %1650 = vst.msk [vmem:[#allocation4] sm:$0xff] %vm769_vm3, %v2958_v50  ;;  %1652 = vst.msk [vmem:[#allocation4 + $0x20] sm:$0xff] %vm769_vm3, %v2967_v54 }
 0xa45   : > { %1654 = vst.msk [vmem:[#allocation4 + $0x8] sm:$0xff] %vm769_vm3, %v3002_v41  ;;  %1656 = vst.msk [vmem:[#allocation4 + $0x28] sm:$0xff] %vm769_vm3, %v3011_v45 }
 0xa46   : > { %1658 = vst.msk [vmem:[#allocation4 + $0x10] sm:$0xff] %vm769_vm3, %v3045_v35  ;;  %1660 = vst.msk [vmem:[#allocation4 + $0x30] sm:$0xff] %vm769_vm3, %v3055_v40 }
 0xa47   : > { %1662 = vst.msk [vmem:[#allocation4 + $0x18] sm:$0xff] %vm769_vm3, %v1546_v31  ;;  %1664 = vst.msk [vmem:[#allocation4 + $0x38] sm:$0xff] %vm769_vm3, %v1547_v34 }
 0xa48 PF: > { %v2608_v50 = vpack.i.bf16 %v3028_v57, %v3026_v52  ;;  %v2618_v54 = vpack.i.bf16 %v1640_v42, %v1592_v37  ;;  %2483 = vmatprep.subr.bf16.mxu1 %v2723_v3  ;;  %2487 = vmatprep.mubr.msk.bf16.mxu1 %vm2724_vm1, %v2723_v3  ;;  %v2623_v41 = vld [vmem:[%s2853_s28 + $0x8] sm:$0xff]   ;;  %s2736_s29 = smov 8   ;;  %v2613_v45 = vpack.i.bf16 %v3072_v55, %v3070_v48  ;;  %s2737_s14 = smov 24   ;;  %v2624_v52 = vld [vmem:[%s2853_s28] sm:$0xff]   ;;  %vm1691_vm5 = vcmask 130048   ;;  %v2627_v26 = vld [vmem:[%s2880_s30 + $0x38] sm:$0xff]  }
 0xa49   : > { %2491 = vmatprep.subr.bf16.mxu0 %v2723_v3  ;;  %2495 = vmatprep.mubr.msk.bf16.mxu0 %vm2724_vm1, %v2723_v3  ;;  %s2738_s19 = smov 16   ;;  %vm1694_vm6 = vcmask 195584   ;;  %s3261_s23 = scalar_lea.vmem %s3236_s4, %s2840_s18  ;;  %v2625_v23 = vld [vmem:[%s2866_s21 + $0x8] sm:$0xff]   ;;  %v2626_v24 = vld [vmem:[%s2866_s21] sm:$0xff]   ;;  %v2628_v9 = vld [vmem:[%s2880_s30 + $0x30] sm:$0xff]  }
 0xa4a   : > { %2609 = vrot.lane.b32.xlu0 %v2608_v50, %s2736_s29  ;;  %2619 = vrot.lane.b32.xlu1 %v2618_v54, %s2737_s14  ;;  %v2298_v2 = vld [vmem:[%s3261_s23] ss:$0 sm:$0xff]  ;;  %v2629_v27 = vld [vmem:[%s2880_s30 + $0x28] sm:$0xff]   ;;  %s3262_s2 = scalar_lea.vmem %s3237_s5, %s2840_s18  ;;  %s3263_s26 = scalar_lea.vmem %s3238_s6, %s2840_s18 }
 0xa4b   : > { %2484 = vmatpush3.bf16.msra.mxu1 %v2623_v41  ;;  %2492 = vmatpush3.bf16.msra.mxu0 %v2625_v23  ;;  %v2630_v28 = vld [vmem:[%s2880_s30 + $0x20] sm:$0xff]   ;;  %v2631_v29 = vld [vmem:[%s2880_s30 + $0x18] sm:$0xff]   ;;  %s2739_s28 = smov [#allocation4]  }
 0xa4c   : > { %2485 = vmatprep.subr.bf16.mxu1 %v2723_v3  ;;  %2493 = vmatprep.subr.bf16.mxu0 %v2723_v3  ;;  %v2302_v38 = vld [vmem:[%s3262_s2] ss:$0 sm:$0xff]  ;;  %s2069_s20 = sshll.u32 %s2739_s28, 4  ;;  %s2070_s20 = int_to_ptr.vmem [resolvable:$true] %s2069_s20 }
 0xa4d   : > { %v2303_v44 = vld [vmem:[%s3263_s26] ss:$0 sm:$0xff]  ;;  %s2643_s23 = scalar_lea.vmem %s2070_s20, 1024  ;;  %p2650_p11 = scmp.lt.s32.totalorder %s2070_s20, %s2070_s20 }
 0xa4e   : > { %2614 = vrot.lane.b32.xlu0 %v2613_v45, %s2738_s19  ;;  %v2632_v45 = vld [vmem:[%s2880_s30 + $0x10] sm:$0xff]   ;;  %p2644_p8 = scmp.ne.s32.totalorder %s2070_s20, %s2643_s23  ;;  %p2651_p12 = scmp.lt.s32.totalorder %s2643_s23, %s2643_s23 }
 0xa4f   : > { %2486 = vmatpush3.bf16.msra.mxu1 %v2624_v52  ;;  %2494 = vmatpush3.bf16.msra.mxu0 %v2626_v24  ;;  %v2633_v52 = vld [vmem:[%s2880_s30 + $0x8] sm:$0xff]  }
 0xa50   : > { %2499 = vmatprep.subr.bf16.mxu1 %v2723_v3  ;;  %p2652_p13 = por %p2651_p12, %p2650_p11 }
 0xabc   : > { %v2610_v57 = vpop.permute.xlu0 %2609  ;;  %v2620_v35 = vpop.permute.xlu1 %2619 }
 0xabd   : > { %v2612_v40 = vunpack.i.h.bf16 %v2610_v57  ;;  %v2611_v47 = vunpack.i.l.bf16 %v2610_v57  ;;  %v2622_v51 = vunpack.i.h.bf16 %v2620_v35  ;;  %v2621_v48 = vunpack.i.l.bf16 %v2620_v35  ;;  %v2634_v57 = vld [vmem:[%s2880_s30] sm:$0xff]   ;;  %s3264_s30 = sld [smem:[#allocation9_spill]] }
 0xabe   : > { %v2304_v35 = vld [vmem:[%s659_s22] ss:$0 sm:$0xff] }
 0xabf   : > { %v1690_v56 = vsel %vm769_vm3, %v2984_v0, %v2612_v40  ;;  %v1689_v58 = vsel %vm769_vm3, %v2982_v60, %v2611_v47 }
 0xac0   : > { %v2615_v49 = vpop.permute.xlu0 %2614 }
 0xac1   : > { %v2617_v53 = vunpack.i.h.bf16 %v2615_v49  ;;  %v2616_v55 = vunpack.i.l.bf16 %v2615_v49 }
 0xac3   : > { %v1692_v59 = vsel %vm1691_vm5, %v1689_v58, %v2616_v55  ;;  %v1693_v61 = vsel %vm1691_vm5, %v1690_v56, %v2617_v53 }
 0xac4   : > { %v1695_v62 = vsel %vm1694_vm6, %v1692_v59, %v2621_v48  ;;  %v1696_v63 = vsel %vm1694_vm6, %v1693_v61, %v2622_v51 }
 0xac5   : > { %v1697_v1 = vpack.c.bf16 %v1696_v63, %v1695_v62 }
 0xac7   : > { %2488 = vmatmul.mubr.msk.bf16.vlgmr.msra.gmra.mxu1 %vm705_vm2, %v1697_v1 }
 0xac8   : > { %2515 = vmatprep.mubr.msk.bf16.mxu1 %vm2724_vm1, %v2723_v3  ;;  %2500 = vmatpush3.bf16.msra.mxu1 %v2627_v26 }
 0xac9   : > { %2501 = vmatprep.subr.bf16.mxu1 %v2723_v3 }
 0xacc   : > { %2502 = vmatpush3.bf16.msra.mxu1 %v2628_v9 }
 0xacd   : > { %2503 = vmatprep.subr.bf16.mxu1 %v2723_v3 }
 0xad0   : > { %2504 = vmatpush3.bf16.msra.mxu1 %v2629_v27 }
 0xad1   : > { %2505 = vmatprep.subr.bf16.mxu1 %v2723_v3 }
 0xad4   : > { %2506 = vmatpush3.bf16.msra.mxu1 %v2630_v28 }
 0xad5   : > { %2507 = vmatprep.subr.bf16.mxu1 %v2723_v3 }
 0xad8   : > { %2508 = vmatpush3.bf16.msra.mxu1 %v2631_v29 }
 0xad9   : > { %2509 = vmatprep.subr.bf16.mxu1 %v2723_v3 }
 0xadc   : > { %2510 = vmatpush3.bf16.msra.mxu1 %v2632_v45 }
 0xadd   : > { %2511 = vmatprep.subr.bf16.mxu1 %v2723_v3 }
 0xae0   : > { %2512 = vmatpush3.bf16.msra.mxu1 %v2633_v52 }
 0xae1   : > { %2513 = vmatprep.subr.bf16.mxu1 %v2723_v3  ;;  %v2308_v3 = vld [vmem:[%s667_s3] ss:$0 sm:$0xff]  ;;  %s3265_s3 = sadd.s32 4294967295, %s3264_s30  }
 0xae2   : > { %p3179_p7 = scmp.eq.s32.totalorder %s3265_s3, 1 }
 0xae4   : > { %2514 = vmatpush3.bf16.msra.mxu1 %v2634_v57  ;;  %p2645_p9 = pnand %p2644_p8, %p3179_p7 }
 0xae6   : > { %p2646_p10 = pneg %p2645_p9 }
 0xae8   : > { %p2653_p0 = pnand %p2652_p13, %p2646_p10 }
 0xb87   : > { %v1758_v4 = vpop.f32.mrf.mxu1 }
 0xb88   : > { %v1759_v0 = vadd.f32 %v2298_v2, %v1758_v4 }
 0xb89   : > { %v2489_v7 = vpop.f32.mrf.mxu1 }
 0xb8a   : > { %v1765_v60 = vadd.f32 %v1759_v0, %v2901_v5 }
 0xb8b   : > { %v1761_v8 = vpop.f32.mrf.mxu1 }
 0xb8c   : > { %v1762_v10 = vadd.f32 %v2298_v2, %v1761_v8  ;;  %v1769_v11 = vsel %vm705_vm2, %v1765_v60, 0.0 }
 0xb8d   : > { %1770 = vadd.xlane.f32.xlu1 %v1769_v11  ;;  %v2490_v13 = vpop.f32.mrf.mxu1 }
 0xb8e   : > { %v1766_v14 = vadd.f32 %v1762_v10, %v2903_v6 }
 0xb90   : > { %v1772_v18 = vsel %vm705_vm2, %v1766_v14, 0.0 }
 0xb91   : > { %1773 = vadd.xlane.f32.xlu0 %v1772_v18 }
 0xc16   : > { %v1771_v15 = vpop.xlane.xlu1 %1770 }
 0xc17   : > { %v1776_v16 = vmul.f32 0.03125, %v1771_v15 }
 0xc19   : > { %v1778_v17 = vsub.f32 %v1765_v60, %v1776_v16 }
 0xc1a   : > { %v1774_v19 = vpop.xlane.xlu0 %1773 }
 0xc1b   : > { %v1777_v5 = vmul.f32 0.03125, %v1774_v19  ;;  %v1780_v20 = vmul.f32 %v1778_v17, %v1778_v17 }
 0xc1d   : > { %v1779_v21 = vsub.f32 %v1766_v14, %v1777_v5  ;;  %v1782_v25 = vsel %vm705_vm2, %v1780_v20, 0.0 }
 0xc1e   : > { %1783 = vadd.xlane.f32.xlu0 %v1782_v25 }
 0xc1f   : > { %v1781_v22 = vmul.f32 %v1779_v21, %v1779_v21 }
 0xc21   : > { %v1785_v6 = vsel %vm705_vm2, %v1781_v22, 0.0 }
 0xc22   : > { %1786 = vadd.xlane.f32.xlu1 %v1785_v6 }
 0xca7   : > { %v1784_v30 = vpop.xlane.xlu0 %1783 }
 0xca8   : > { %v1788_v31 = vmul.f32 0.03125, %v1784_v30 }
 0xcaa   : > { %v1790_v32 = vadd.f32 1e-05, %v1788_v31 }
 0xcab   : > { %v1787_v33 = vpop.xlane.xlu1 %1786 }
 0xcac   : > { %2635 = vrsqrt.f32 %v1790_v32  ;;  %v1789_v34 = vmul.f32 0.03125, %v1787_v33 }
 0xcae   : > { %v1791_v36 = vadd.f32 1e-05, %v1789_v34 }
 0xcb0   : > { %2637 = vrsqrt.f32 %v1791_v36 }
 0xcb9   : > { %v2636_v37 = vpop.eup %2635 }
 0xcba   : > { %v1794_v12 = vmul.f32 %v2636_v37, %v1778_v17 }
 0xcbc   : > { %v1802_v43 = vmul.f32 %v2302_v38, %v1794_v12 }
 0xcbd   : > { %v2638_v39 = vpop.eup %2637 }
 0xcbe   : > { %v1795_v42 = vmul.f32 %v2638_v39, %v1779_v21  ;;  %v1810_v50 = vadd.f32 %v2303_v44, %v1802_v43 }
 0xcc0   : > { %v1803_v46 = vmul.f32 %v2302_v38, %v1795_v42 }
 0xcc2   : > { %v1811_v54 = vadd.f32 %v2303_v44, %v1803_v46 }
 0xcc4   : > { %v1812_v41 = vpack.c.bf16 %v1811_v54, %v1810_v50 }
 0xcc6   : > { %2496 = vmatmul.mubr.msk.bf16.vlgmr.msra.gmra.mxu0 %vm705_vm2, %v1812_v41 }
 0xd86   : > { %v1873_v40 = vpop.f32.mrf.mxu0 }
 0xd87   : > { %v1874_v49 = vadd.f32 %v2304_v35, %v1873_v40 }
 0xd88   : > { %v2497_v47 = vpop.f32.mrf.mxu0 }
 0xd89   : > { %v1880_v55 = vmax.f32 %v1874_v49, 0.0 }
 0xd8a   : > { %v1876_v51 = vpop.f32.mrf.mxu0 }
 0xd8b   : > { %v1877_v48 = vadd.f32 %v2304_v35, %v1876_v51 }
 0xd8c   : > { %v2498_v53 = vpop.f32.mrf.mxu0 }
 0xd8d   : > { %v1881_v56 = vmax.f32 %v1877_v48, 0.0 }
 0xd8f   : > { %v1882_v58 = vpack.c.bf16 %v1881_v56, %v1880_v55 }
 0xd91   : > { %2516 = vmatmul.mubr.bf16.vlgmr.msra.gmra.mxu1 %v1882_v58 }
 0xe51   : > { %v1988_v59 = vpop.f32.mrf.mxu1 }
 0xe52   : > { %v1989_v61 = vadd.f32 %v2308_v3, %v1988_v59 }
 0xe53   : > { %v2517_v62 = vpop.f32.mrf.mxu1 }
 0xe54   : > { %v1995_v63 = vadd.f32 %v1989_v61, %v1810_v50 }
 0xe55   : > { %v1991_v1 = vpop.f32.mrf.mxu1 }
 0xe56   : > { %v1992_v2 = vadd.f32 %v2308_v3, %v1991_v1  ;;  %v1999_v4 = vsel %vm705_vm2, %v1995_v63, 0.0 }
 0xe57   : > { %2000 = vadd.xlane.f32.xlu0 %v1999_v4  ;;  %v2518_v0 = vpop.f32.mrf.mxu1 }
 0xe58   : > { %v1996_v7 = vadd.f32 %v1992_v2, %v1811_v54 }
 0xe5a   : > { %v2002_v60 = vsel %vm705_vm2, %v1996_v7, 0.0 }
 0xe5b   : > { %2003 = vadd.xlane.f32.xlu1 %v2002_v60 }
 0xee0   : > { %v2001_v8 = vpop.xlane.xlu0 %2000 }
 0xee1   : > { %v2005_v10 = vmul.f32 0.03125, %v2001_v8 }
 0xee3   : > { %v2007_v11 = vsub.f32 %v1995_v63, %v2005_v10 }
 0xee4   : > { %v2004_v13 = vpop.xlane.xlu1 %2003 }
 0xee5   : > { %v2006_v14 = vmul.f32 0.03125, %v2004_v13  ;;  %v2009_v18 = vmul.f32 %v2007_v11, %v2007_v11 }
 0xee7   : > { %v2008_v15 = vsub.f32 %v1996_v7, %v2006_v14  ;;  %v2011_v16 = vsel %vm705_vm2, %v2009_v18, 0.0 }
 0xee8   : > { %2012 = vadd.xlane.f32.xlu0 %v2011_v16 }
 0xee9   : > { %v2010_v17 = vmul.f32 %v2008_v15, %v2008_v15 }
 0xeeb   : > { %v2014_v19 = vsel %vm705_vm2, %v2010_v17, 0.0 }
 0xeec   : > { %2015 = vadd.xlane.f32.xlu1 %v2014_v19 }
 0xeed   : > { %2656 = shalt.err (!%p2653_p0)
}
 0xeee   : > { %s2740_s21 = smov 128   ;;  %s3267_s27 = sld [smem:[#allocation15_spill]]  ;;  %v2317_v24 = vld [vmem:[%s670_s1] ss:$0 sm:$0xff] }
 0xeef   : > { %v2318_v9 = vld [vmem:[%s673_s15] ss:$0 sm:$0xff]  ;;  %s2741_s14 = smov [#allocation2]  }
 0xef0   : > { %s2052_s19 = sshll.u32 %s2741_s14, 4  ;;  %s2053_s19 = int_to_ptr.vmem [resolvable:$true] %s2052_s19 }
 0xef1   : > { %s2667_s1 = scalar_lea.vmem %s2053_s19, 256  ;;  %p2674_p4 = scmp.lt.s32.totalorder %s2053_s19, %s2053_s19 }
 0xef2   : > { %p2668_p1 = scmp.ne.s32.totalorder %s2053_s19, %s2667_s1  ;;  %p2675_p5 = scmp.lt.s32.totalorder %s2667_s1, %s2667_s1 }
 0xef4   : > { %2522 = dma.vmem_to_hbm [thread:$0]  (%p3179_p7), %s2070_s20, 1024, %s3267_s27, [#allocation5], %s2740_s21, %s2740_s21, %s2736_s29  }
 0xef5   : > { %p2669_p2 = pnand %p2668_p1, %p3179_p7  ;;  %p2676_p6 = por %p2675_p5, %p2674_p4 }
 0xef7   : > { %p2670_p3 = pneg %p2669_p2 }
 0xef9   : > { %p2677_p8 = pnand %p2676_p6, %p2670_p3 }
 0xf71   : > { %v2013_v5 = vpop.xlane.xlu0 %2012 }
 0xf72   : > { %v2017_v20 = vmul.f32 0.03125, %v2013_v5 }
 0xf74   : > { %v2019_v21 = vadd.f32 1e-05, %v2017_v20 }
 0xf75   : > { %v2016_v25 = vpop.xlane.xlu1 %2015 }
 0xf76   : > { %2639 = vrsqrt.f32 %v2019_v21  ;;  %v2018_v22 = vmul.f32 0.03125, %v2016_v25 }
 0xf78   : > { %v2020_v6 = vadd.f32 1e-05, %v2018_v22 }
 0xf7a   : > { %2641 = vrsqrt.f32 %v2020_v6 }
 0xf83   : > { %v2640_v23 = vpop.eup %2639 }
 0xf84   : > { %v2023_v26 = vmul.f32 %v2640_v23, %v2007_v11 }
 0xf86   : > { %v2031_v27 = vmul.f32 %v2317_v24, %v2023_v26 }
 0xf87   : > { %v2642_v28 = vpop.eup %2641 }
 0xf88   : > { %v2024_v29 = vmul.f32 %v2642_v28, %v2008_v15  ;;  %v2039_v30 = vadd.f32 %v2318_v9, %v2031_v27 }
 0xf8a   : > { %v2032_v31 = vmul.f32 %v2317_v24, %v2024_v29  ;;  %2041 = vst.msk [vmem:[#allocation2] sm:$0xff] %vm705_vm2, %v2039_v30 }
 0xf8c   : > { %v2040_v32 = vadd.f32 %v2318_v9, %v2032_v31 }
 0xf8e   : > { %2042 = vst.msk [vmem:[#allocation2 + $0x8] sm:$0xff] %vm705_vm2, %v2040_v32 }
 0xf8f   : > { %2680 = shalt.err (!%p2677_p8)
}
 0xf90   : > { %s3268_s30 = sld [smem:[#allocation14_spill]] }
 0xf96   : > { %2520 = dma.vmem_to_hbm [thread:$0]  (%p3179_p7), %s2053_s19, 256, %s3268_s30, [#allocation3], %s2740_s21, %s2740_s21, %s2736_s29  }
 0xf97   : > { %2704 = dma.done.wait (%p3179_p7), [#allocation3], 256  }
 0xf98   : > { %2706 = vsyncadd (%p3179_p7), [#allocation3], 4294967040 }
 0xf99   : > { %2708 = dma.done.wait (%p3179_p7), [#allocation5], 1024  }
 0xf9a   : > { %2710 = vsyncadd (%p3179_p7), [#allocation5], 4294966272 }
 0xf9b PF: > { %s3269_s3 = sld [smem:[#allocation9_spill]] }
 0xf9c   : > { %s3270_s29 = sld [smem:[#allocation8_spill]] }
 0xf9d   : > { %s3271_s30 = sld [smem:[#allocation10_spill]] }
 0xfa1   : > { %s27_s15 = sadd.s32 1, %s3269_s3  }
 0xfa2   : > { %p24_p9 = scmp.ge.s32.totalorder %s27_s15, 4  }
 0xfa4   :  { %26 = sbr.rel (!%p24_p9) target bundleno = 9 (0x9), region = 160 }
 0xfa9   :  { %2089 = vsyncpa [#allocation3], 1 }
 0xfaa   :  { %2091 = vsyncpa [#allocation3 + $0x1], 1 }
 0xfab   :  { %2092 = vsyncpa [#allocation5], 1 }

</bundles_post_ra>
